<compile_context>
chip_gen: v7x
topology: tpu7x:2x2x1
jax: 0.10.0
libtpu: 0.0.40
codegen_flags: <defaults>
</compile_context>

<pallas_src>
import jax
import jax.numpy as jnp
from jax.experimental import pallas as pl
from jax.experimental.pallas import tpu as pltpu

BN_EPS = 1e-5
Lambda_dim = 32
out_channels = 48
node_trns_layers = [out_channels, 64, Lambda_dim]      # [48, 64, 32]
MLP_LAYER_DIMS = node_trns_layers + [Lambda_dim]       # [48, 64, 32, 32]
NUM_REL = 2
IN_FEATURES = 16
N_NODES = 64
GRAPHS_PER_STEP = 2                                    # 2 graphs / grid step -> M = 128
LANES = 128                                            # lane-dense padded width

# weight-slab row offsets (all multiples of the bf16 sublane tile = 16)
ROW_BIAS = 0                         # rows 0..4: enc_b, b1, b2, b3, b4 (rest 0)
ROW_ENC = 16                         # [16, 128]
ROW_W1 = ROW_ENC + 16                # 32
ROW_W2 = ROW_W1 + LANES              # 160
ROW_W3 = ROW_W2 + LANES              # 288
ROW_W4 = ROW_W3 + LANES              # 416
ROW_LAM = ROW_W4 + LANES             # 544
SLAB_ROWS = ROW_LAM + LANES          # 672


# --------------------------- fused Pallas kernel ------------------------------

def _fused_gae_kernel(x_ref, slab_ref, z_ref, adj_ref):
    f32, bf16 = jnp.float32, jnp.bfloat16
    m = GRAPHS_PER_STEP * N_NODES                       # 128 rows (MXU-native M)

    # One f32 bias block [16,128]; rows 0..4 = enc_b, b1..b4 (rest zero).
    biases = slab_ref[ROW_BIAS:ROW_BIAS + 16, :].astype(f32)

    def dense(h, w_bf16, brow):
        acc = jnp.dot(h.astype(bf16), w_bf16, preferred_element_type=f32)
        return jnp.tanh(acc + biases[brow:brow + 1, :])

    # Encoder: z = tanh(x @ We + be); padded cols 48..127 are exactly 0.
    x = x_ref[...].reshape(m, IN_FEATURES)                          # [128, 16]
    z = dense(x, slab_ref[ROW_ENC:ROW_ENC + IN_FEATURES, :], 0)     # [128, 128]

    # Relation-batched node_mlp (BN folded into W/b, blkdiag + zero-padding).
    h = dense(z, slab_ref[ROW_W1:ROW_W1 + LANES, :], 1)
    h = dense(h, slab_ref[ROW_W2:ROW_W2 + LANES, :], 2)
    h = dense(h, slab_ref[ROW_W3:ROW_W3 + LANES, :], 3)
    h = dense(h, slab_ref[ROW_W4:ROW_W4 + LANES, :], 4)

    # SBM: sum_r h_r Lambda_r h_r^T == H blkdiag(Lambda) H^T ; H = [h_0 | h_1]
    hb = h.astype(bf16)
    zl = jnp.dot(hb, slab_ref[ROW_LAM:ROW_LAM + LANES, :],
                 preferred_element_type=f32)                        # [128, 128]
    zlb = zl.astype(bf16)

    for g in range(GRAPHS_PER_STEP):
        rows = slice(g * N_NODES, (g + 1) * N_NODES)    # sublane-aligned slices
        z_ref[g] = z[rows, :out_channels]
        # contraction on dim 1 of both operands; the implied rhs transpose lowers
        # to an XLU vxpose (slack there), not a VMEM re-layout copy.
        acc_g = jax.lax.dot_general(zlb[rows, :], hb[rows, :],
                                    (((1,), (1,)), ((), ())),
                                    preferred_element_type=f32)     # [64, 64]
        adj_ref[g] = jax.nn.sigmoid(acc_g)


@jax.jit
def gae_forward_decode(slab, x):
    """x: [B, N_NODES, IN_FEATURES] f32 -> (z [B,N,48], adj [B,N,N]) in f32."""
    b = x.shape[0]
    assert b % GRAPHS_PER_STEP == 0, "batch must be a multiple of GRAPHS_PER_STEP"
    steps = b // GRAPHS_PER_STEP
    m = GRAPHS_PER_STEP * N_NODES

    # advisory cost estimate for XLA scheduling around the custom call
    flops_step = (2 * m * IN_FEATURES * LANES
                  + 4 * 2 * m * LANES * LANES           # tower layers
                  + 2 * m * LANES * LANES               # h @ blkdiag(Lambda)
                  + GRAPHS_PER_STEP * 2 * N_NODES * LANES * N_NODES)
    transc_step = 5 * m * LANES + GRAPHS_PER_STEP * N_NODES * N_NODES
    bytes_io = (b * N_NODES * (IN_FEATURES + out_channels + N_NODES) * 4
                + SLAB_ROWS * LANES * 2)
    cost = pl.CostEstimate(flops=flops_step * steps,
                           transcendentals=transc_step * steps,
                           bytes_accessed=bytes_io)

    return pl.pallas_call(
        _fused_gae_kernel,
        out_shape=(jax.ShapeDtypeStruct((b, N_NODES, out_channels), jnp.float32),
                   jax.ShapeDtypeStruct((b, N_NODES, N_NODES), jnp.float32)),
        grid=(steps,),
        in_specs=[
            pl.BlockSpec((GRAPHS_PER_STEP, N_NODES, IN_FEATURES),
                         lambda i: (i, 0, 0)),
            # constant block index -> weight slab DMA'd once, stays VMEM-resident
            pl.BlockSpec((SLAB_ROWS, LANES), lambda i: (0, 0)),
        ],
        out_specs=(
            pl.BlockSpec((GRAPHS_PER_STEP, N_NODES, out_channels),
                         lambda i: (i, 0, 0)),
            pl.BlockSpec((GRAPHS_PER_STEP, N_NODES, N_NODES),
                         lambda i: (i, 0, 0)),
        ),
        compiler_params=pltpu.CompilerParams(dimension_semantics=("parallel",)),
        cost_estimate=cost,
    )(x, slab)


# --------------------------- parameter setup ---------------------------------

def init_params(key):
    params = {}
    k_enc, k_dec = jax.random.split(key)

    # Encoder: Linear(IN_FEATURES -> out_channels)
    kw, kb = jax.random.split(k_enc)
    params["enc_w"] = (jax.random.normal(kw, (IN_FEATURES, out_channels), jnp.float32)
                       / jnp.sqrt(IN_FEATURES))
    params["enc_b"] = jax.random.normal(kb, (1, out_channels), jnp.float32) * 0.01

    # Decoder: NUM_REL node_mlp towers + Lambda matrices.
    rel_keys = jax.random.split(k_dec, NUM_REL)
    rels, lambdas = [], []
    for r in range(NUM_REL):
        dims = [out_channels] + MLP_LAYER_DIMS          # [48, 48, 64, 32, 32]
        layer_keys = jax.random.split(rel_keys[r], len(dims))
        layers = []
        for li in range(len(dims) - 1):
            fin, fout = dims[li], dims[li + 1]
            kw, kb = jax.random.split(layer_keys[li])
            w = jax.random.normal(kw, (fin, fout), jnp.float32) / jnp.sqrt(fin)
            bvec = jax.random.normal(kb, (1, fout), jnp.float32) * 0.01
            # BatchNorm1d(fin): gamma=1, beta=0, running_mean=0, running_var=1
            bn = dict(gamma=jnp.ones((1, fin), jnp.float32),
                      beta=jnp.zeros((1, fin), jnp.float32),
                      mean=jnp.zeros((1, fin), jnp.float32),
                      var=jnp.ones((1, fin), jnp.float32))
            layers.append(dict(w=w, b=bvec, bn=bn))
        rels.append(layers)
        bound = jnp.sqrt(6.0 / (Lambda_dim + Lambda_dim))       # xavier_uniform
        lam = jax.random.uniform(layer_keys[-1], (Lambda_dim, Lambda_dim),
                                 jnp.float32, minval=-bound, maxval=bound)
        lambdas.append(lam)
    params["rels"] = rels
    params["lambdas"] = jnp.stack(lambdas, axis=0)              # [R, 32, 32]
    return params


def _block_diag2(a, b):
    za = jnp.zeros((a.shape[0], b.shape[1]), jnp.float32)
    zb = jnp.zeros((b.shape[0], a.shape[1]), jnp.float32)
    return jnp.concatenate([jnp.concatenate([a, za], axis=1),
                            jnp.concatenate([zb, b], axis=1)], axis=0)


def _pad2(a, rows, cols):
    return jnp.pad(a, ((0, rows - a.shape[0]), (0, cols - a.shape[1])))


def prepare_fused_params(params):
    """Fold eval-mode BN into the Linears, batch the two relation towers, pad to
    lane-dense 128-wide blocks and pack everything into a single bf16 slab."""
    folded = []                                         # folded[r][layer] = (w', b')
    for layers in params["rels"]:
        fl = []
        for layer in layers:
            bn = layer["bn"]
            scale = bn["gamma"] * jax.lax.rsqrt(bn["var"] + BN_EPS)      # [1, fin]
            w_f = layer["w"] * scale.T                                   # [fin, fout]
            b_f = layer["b"] + (bn["beta"] - bn["mean"] * scale) @ layer["w"]
            fl.append((w_f, b_f))
        folded.append(fl)

    # relation batching: layer 1 shares z (concat fout), layers 2-4 block-diag.
    w1 = jnp.concatenate([folded[0][0][0], folded[1][0][0]], axis=1)     # [48, 96]
    b1 = jnp.concatenate([folded[0][0][1], folded[1][0][1]], axis=1)
    w2 = _block_diag2(folded[0][1][0], folded[1][1][0])                  # [96, 128]
    b2 = jnp.concatenate([folded[0][1][1], folded[1][1][1]], axis=1)
    w3 = _block_diag2(folded[0][2][0], folded[1][2][0])                  # [128, 64]
    b3 = jnp.concatenate([folded[0][2][1], folded[1][2][1]], axis=1)
    w4 = _block_diag2(folded[0][3][0], folded[1][3][0])                  # [64, 64]
    b4 = jnp.concatenate([folded[0][3][1], folded[1][3][1]], axis=1)
    lam = _block_diag2(params["lambdas"][0], params["lambdas"][1])       # [64, 64]

    # bias block: rows 0..4 used, zero elsewhere (zero padding is exact).
    bias_blk = jnp.zeros((16, LANES), jnp.float32)
    for row, bvec in enumerate((params["enc_b"], b1, b2, b3, b4)):
        bias_blk = bias_blk.at[row, :bvec.shape[1]].set(bvec[0])

    slab = jnp.concatenate([
        bias_blk,                                   # rows   0 ..  15
        _pad2(params["enc_w"], 16, LANES),          # rows  16 ..  31
        _pad2(w1, LANES, LANES),                    # rows  32 .. 159
        _pad2(w2, LANES, LANES),                    # rows 160 .. 287
        _pad2(w3, LANES, LANES),                    # rows 288 .. 415
        _pad2(w4, LANES, LANES),                    # rows 416 .. 543
        _pad2(lam, LANES, LANES),                   # rows 544 .. 671
    ], axis=0)
    assert slab.shape == (SLAB_ROWS, LANES)
    return slab.astype(jnp.bfloat16)                # bf16 MXU operands, 1 DMA


# --------------------------- reference (plain JAX, f32) -----------------------

def _ref_decode(params, z):
    acc = jnp.zeros((z.shape[0], z.shape[0]), jnp.float32)
    for r, layers in enumerate(params["rels"]):
        h = z
        for layer in layers:
            bn = layer["bn"]
            hn = ((h - bn["mean"]) * jax.lax.rsqrt(bn["var"] + BN_EPS)
                  * bn["gamma"] + bn["beta"])
            h = jnp.tanh(hn @ layer["w"] + layer["b"])
        lam = params["lambdas"][r]
        acc = acc + h @ (lam @ h.T)
    return jax.nn.sigmoid(acc)


# TODO(synk): GAE.recon_loss / GAE.test / forward_pairwise use negative_sampling
# and sklearn ROC/AP metrics (host-side); only forward(encode)+decode are kernels.

if __name__ == "__main__":
    key = jax.random.PRNGKey(0)
    k_params, k_x = jax.random.split(key)
    params = init_params(k_params)
    slab = prepare_fused_params(params)

    batch = 8                       # 8 graphs -> grid of 4 steps, 2 graphs / step
    x = jax.random.normal(k_x, (batch, N_NODES, IN_FEATURES), jnp.float32)

    z, adj = gae_forward_decode(slab, x)            # one fused, gridded pallas_call
    z, adj = jax.block_until_ready((z, adj))

    assert z.shape == (batch, N_NODES, out_channels)
    assert adj.shape == (batch, N_NODES, N_NODES)
    assert bool(jnp.all(jnp.isfinite(adj)))

    # f32 reference: per-graph, per-relation loop, unfolded BN (faithful module).
    z_ref = jnp.tanh(x @ params["enc_w"] + params["enc_b"])
    adj_ref = jnp.stack([_ref_decode(params, z_ref[g]) for g in range(batch)])

    # Tolerances sized for intentional bf16 weight/operand quantization
    # (adj is a sigmoid output in [0,1], so absolute error is the right metric).
    assert bool(jnp.allclose(z, z_ref, rtol=2e-2, atol=2e-2))
    max_err = float(jnp.max(jnp.abs(adj - adj_ref)))
    mean_err = float(jnp.mean(jnp.abs(adj - adj_ref)))
    assert max_err < 5e-2 and mean_err < 1e-2, (max_err, mean_err)

    print("KERNEL_OK")
</pallas_src>

<mosaic_0001>
module attributes {stable_mosaic.version = 11 : i64} {
  func.func @_fused_gae_kernel(%arg0: i32, %arg1: memref<2x64x16xf32, #tpu.memory_space<vmem>>, %arg2: memref<672x128xbf16, #tpu.memory_space<vmem>>, %arg3: memref<2x64x48xf32, #tpu.memory_space<vmem>>, %arg4: memref<2x64x64xf32, #tpu.memory_space<vmem>>) attributes {dimension_semantics = [#tpu.dimension_semantics<parallel>], iteration_bounds = array<i64: 4>, scalar_prefetch = 0 : i64, scratch_operands = 0 : i64, tpu.core_type = #tpu.core_type<tc>, window_params = [{transform_indices = @transform_0, window_bounds = array<i64: 2, 64, 16>}, {pipeline_mode = #tpu.pipeline_mode<synchronous>, transform_indices = @transform_1, window_bounds = array<i64: 672, 128>}, {transform_indices = @transform_2, window_bounds = array<i64: 2, 64, 48>}, {transform_indices = @transform_3, window_bounds = array<i64: 2, 64, 64>}]} {
    %c0 = arith.constant 0 : index
    %c0_0 = arith.constant 0 : index
    %0 = vector.load %arg2[%c0, %c0_0] : memref<672x128xbf16, #tpu.memory_space<vmem>>, vector<16x128xbf16>
    %1 = arith.extf %0 : vector<16x128xbf16> to vector<16x128xf32>
    %c0_1 = arith.constant 0 : index
    %c0_2 = arith.constant 0 : index
    %c0_3 = arith.constant 0 : index
    %2 = vector.load %arg1[%c0_1, %c0_2, %c0_3] : memref<2x64x16xf32, #tpu.memory_space<vmem>>, vector<2x64x16xf32>
    %3 = vector.shape_cast %2 : vector<2x64x16xf32> to vector<128x16xf32>
    %c16 = arith.constant 16 : index
    %c0_4 = arith.constant 0 : index
    %4 = vector.load %arg2[%c16, %c0_4] : memref<672x128xbf16, #tpu.memory_space<vmem>>, vector<16x128xbf16>
    %5 = arith.truncf %3 : vector<128x16xf32> to vector<128x16xbf16>
    %cst = arith.constant dense<0.000000e+00> : vector<128x128xf32>
    %6 = tpu.matmul %5, %4, %cst {dimension_numbers = #tpu.dot_dimension_numbers<[1], [0], [0], [1], [0, 0, 1, 1], [], []>} : vector<128x16xbf16>, vector<16x128xbf16>, vector<128x128xf32> -> vector<128x128xf32>
    %7 = vector.extract_strided_slice %1 {offsets = [0, 0], sizes = [1, 128], strides = [1, 1]} : vector<16x128xf32> to vector<1x128xf32>
    %8 = vector.broadcast %7 : vector<1x128xf32> to vector<128x128xf32>
    %9 = arith.addf %6, %8 : vector<128x128xf32>
    %10 = math.tanh %9 : vector<128x128xf32>
    %c32 = arith.constant 32 : index
    %c0_5 = arith.constant 0 : index
    %11 = vector.load %arg2[%c32, %c0_5] : memref<672x128xbf16, #tpu.memory_space<vmem>>, vector<128x128xbf16>
    %12 = arith.truncf %10 : vector<128x128xf32> to vector<128x128xbf16>
    %cst_6 = arith.constant dense<0.000000e+00> : vector<128x128xf32>
    %13 = tpu.matmul %12, %11, %cst_6 {dimension_numbers = #tpu.dot_dimension_numbers<[1], [0], [0], [1], [0, 0, 1, 1], [], []>} : vector<128x128xbf16>, vector<128x128xbf16>, vector<128x128xf32> -> vector<128x128xf32>
    %14 = vector.extract_strided_slice %1 {offsets = [1, 0], sizes = [1, 128], strides = [1, 1]} : vector<16x128xf32> to vector<1x128xf32>
    %15 = vector.broadcast %14 : vector<1x128xf32> to vector<128x128xf32>
    %16 = arith.addf %13, %15 : vector<128x128xf32>
    %17 = math.tanh %16 : vector<128x128xf32>
    %c160 = arith.constant 160 : index
    %c0_7 = arith.constant 0 : index
    %18 = vector.load %arg2[%c160, %c0_7] : memref<672x128xbf16, #tpu.memory_space<vmem>>, vector<128x128xbf16>
    %19 = arith.truncf %17 : vector<128x128xf32> to vector<128x128xbf16>
    %cst_8 = arith.constant dense<0.000000e+00> : vector<128x128xf32>
    %20 = tpu.matmul %19, %18, %cst_8 {dimension_numbers = #tpu.dot_dimension_numbers<[1], [0], [0], [1], [0, 0, 1, 1], [], []>} : vector<128x128xbf16>, vector<128x128xbf16>, vector<128x128xf32> -> vector<128x128xf32>
    %21 = vector.extract_strided_slice %1 {offsets = [2, 0], sizes = [1, 128], strides = [1, 1]} : vector<16x128xf32> to vector<1x128xf32>
    %22 = vector.broadcast %21 : vector<1x128xf32> to vector<128x128xf32>
    %23 = arith.addf %20, %22 : vector<128x128xf32>
    %24 = math.tanh %23 : vector<128x128xf32>
    %c288 = arith.constant 288 : index
    %c0_9 = arith.constant 0 : index
    %25 = vector.load %arg2[%c288, %c0_9] : memref<672x128xbf16, #tpu.memory_space<vmem>>, vector<128x128xbf16>
    %26 = arith.truncf %24 : vector<128x128xf32> to vector<128x128xbf16>
    %cst_10 = arith.constant dense<0.000000e+00> : vector<128x128xf32>
    %27 = tpu.matmul %26, %25, %cst_10 {dimension_numbers = #tpu.dot_dimension_numbers<[1], [0], [0], [1], [0, 0, 1, 1], [], []>} : vector<128x128xbf16>, vector<128x128xbf16>, vector<128x128xf32> -> vector<128x128xf32>
    %28 = vector.extract_strided_slice %1 {offsets = [3, 0], sizes = [1, 128], strides = [1, 1]} : vector<16x128xf32> to vector<1x128xf32>
    %29 = vector.broadcast %28 : vector<1x128xf32> to vector<128x128xf32>
    %30 = arith.addf %27, %29 : vector<128x128xf32>
    %31 = math.tanh %30 : vector<128x128xf32>
    %c416 = arith.constant 416 : index
    %c0_11 = arith.constant 0 : index
    %32 = vector.load %arg2[%c416, %c0_11] : memref<672x128xbf16, #tpu.memory_space<vmem>>, vector<128x128xbf16>
    %33 = arith.truncf %31 : vector<128x128xf32> to vector<128x128xbf16>
    %cst_12 = arith.constant dense<0.000000e+00> : vector<128x128xf32>
    %34 = tpu.matmul %33, %32, %cst_12 {dimension_numbers = #tpu.dot_dimension_numbers<[1], [0], [0], [1], [0, 0, 1, 1], [], []>} : vector<128x128xbf16>, vector<128x128xbf16>, vector<128x128xf32> -> vector<128x128xf32>
    %35 = vector.extract_strided_slice %1 {offsets = [4, 0], sizes = [1, 128], strides = [1, 1]} : vector<16x128xf32> to vector<1x128xf32>
    %36 = vector.broadcast %35 : vector<1x128xf32> to vector<128x128xf32>
    %37 = arith.addf %34, %36 : vector<128x128xf32>
    %38 = math.tanh %37 : vector<128x128xf32>
    %39 = arith.truncf %38 : vector<128x128xf32> to vector<128x128xbf16>
    %c544 = arith.constant 544 : index
    %c0_13 = arith.constant 0 : index
    %40 = vector.load %arg2[%c544, %c0_13] : memref<672x128xbf16, #tpu.memory_space<vmem>>, vector<128x128xbf16>
    %cst_14 = arith.constant dense<0.000000e+00> : vector<128x128xf32>
    %41 = tpu.matmul %39, %40, %cst_14 {dimension_numbers = #tpu.dot_dimension_numbers<[1], [0], [0], [1], [0, 0, 1, 1], [], []>} : vector<128x128xbf16>, vector<128x128xbf16>, vector<128x128xf32> -> vector<128x128xf32>
    %42 = arith.truncf %41 : vector<128x128xf32> to vector<128x128xbf16>
    %43 = vector.extract_strided_slice %10 {offsets = [0, 0], sizes = [64, 48], strides = [1, 1]} : vector<128x128xf32> to vector<64x48xf32>
    %c0_15 = arith.constant 0 : index
    %c0_16 = arith.constant 0 : index
    %c0_17 = arith.constant 0 : index
    %44 = vector.load %arg3[%c0_15, %c0_16, %c0_17] : memref<2x64x48xf32, #tpu.memory_space<vmem>>, vector<1x64x48xf32>
    %45 = vector.shape_cast %44 : vector<1x64x48xf32> to vector<64x48xf32>
    %46 = vector.shape_cast %43 : vector<64x48xf32> to vector<1x64x48xf32>
    tpu.vector_store %arg3[%c0_15, %c0_16, %c0_17], %46 {strides = array<i32>} : memref<2x64x48xf32, #tpu.memory_space<vmem>>, vector<1x64x48xf32>,
    %47 = vector.extract_strided_slice %42 {offsets = [0, 0], sizes = [64, 128], strides = [1, 1]} : vector<128x128xbf16> to vector<64x128xbf16>
    %48 = vector.extract_strided_slice %39 {offsets = [0, 0], sizes = [64, 128], strides = [1, 1]} : vector<128x128xbf16> to vector<64x128xbf16>
    %cst_18 = arith.constant dense<0.000000e+00> : vector<64x64xf32>
    %49 = tpu.matmul %47, %48, %cst_18 {dimension_numbers = #tpu.dot_dimension_numbers<[1], [1], [0], [0], [0, 0, 1, 0], [], []>} : vector<64x128xbf16>, vector<64x128xbf16>, vector<64x64xf32> -> vector<64x64xf32>
    %50 = arith.negf %49 : vector<64x64xf32>
    %51 = math.exp %50 : vector<64x64xf32>
    %cst_19 = arith.constant 1.000000e+00 : f32
    %52 = vector.broadcast %cst_19 : f32 to vector<64x64xf32>
    %53 = arith.addf %52, %51 : vector<64x64xf32>
    %54 = arith.divf %52, %53 : vector<64x64xf32>
    %c0_20 = arith.constant 0 : index
    %c0_21 = arith.constant 0 : index
    %c0_22 = arith.constant 0 : index
    %55 = vector.load %arg4[%c0_20, %c0_21, %c0_22] : memref<2x64x64xf32, #tpu.memory_space<vmem>>, vector<1x64x64xf32>
    %56 = vector.shape_cast %55 : vector<1x64x64xf32> to vector<64x64xf32>
    %57 = vector.shape_cast %54 : vector<64x64xf32> to vector<1x64x64xf32>
    tpu.vector_store %arg4[%c0_20, %c0_21, %c0_22], %57 {strides = array<i32>} : memref<2x64x64xf32, #tpu.memory_space<vmem>>, vector<1x64x64xf32>,
    %58 = vector.extract_strided_slice %10 {offsets = [64, 0], sizes = [64, 48], strides = [1, 1]} : vector<128x128xf32> to vector<64x48xf32>
    %c1 = arith.constant 1 : index
    %c0_23 = arith.constant 0 : index
    %c0_24 = arith.constant 0 : index
    %59 = vector.load %arg3[%c1, %c0_23, %c0_24] : memref<2x64x48xf32, #tpu.memory_space<vmem>>, vector<1x64x48xf32>
    %60 = vector.shape_cast %59 : vector<1x64x48xf32> to vector<64x48xf32>
    %61 = vector.shape_cast %58 : vector<64x48xf32> to vector<1x64x48xf32>
    tpu.vector_store %arg3[%c1, %c0_23, %c0_24], %61 {strides = array<i32>} : memref<2x64x48xf32, #tpu.memory_space<vmem>>, vector<1x64x48xf32>,
    %62 = vector.extract_strided_slice %42 {offsets = [64, 0], sizes = [64, 128], strides = [1, 1]} : vector<128x128xbf16> to vector<64x128xbf16>
    %63 = vector.extract_strided_slice %39 {offsets = [64, 0], sizes = [64, 128], strides = [1, 1]} : vector<128x128xbf16> to vector<64x128xbf16>
    %cst_25 = arith.constant dense<0.000000e+00> : vector<64x64xf32>
    %64 = tpu.matmul %62, %63, %cst_25 {dimension_numbers = #tpu.dot_dimension_numbers<[1], [1], [0], [0], [0, 0, 1, 0], [], []>} : vector<64x128xbf16>, vector<64x128xbf16>, vector<64x64xf32> -> vector<64x64xf32>
    %65 = arith.negf %64 : vector<64x64xf32>
    %66 = math.exp %65 : vector<64x64xf32>
    %cst_26 = arith.constant 1.000000e+00 : f32
    %67 = vector.broadcast %cst_26 : f32 to vector<64x64xf32>
    %68 = arith.addf %67, %66 : vector<64x64xf32>
    %69 = arith.divf %67, %68 : vector<64x64xf32>
    %c1_27 = arith.constant 1 : index
    %c0_28 = arith.constant 0 : index
    %c0_29 = arith.constant 0 : index
    %70 = vector.load %arg4[%c1_27, %c0_28, %c0_29] : memref<2x64x64xf32, #tpu.memory_space<vmem>>, vector<1x64x64xf32>
    %71 = vector.shape_cast %70 : vector<1x64x64xf32> to vector<64x64xf32>
    %72 = vector.shape_cast %69 : vector<64x64xf32> to vector<1x64x64xf32>
    tpu.vector_store %arg4[%c1_27, %c0_28, %c0_29], %72 {strides = array<i32>} : memref<2x64x64xf32, #tpu.memory_space<vmem>>, vector<1x64x64xf32>,
    return
  }
  func.func @transform_0(%arg0: i32) -> (i32, i32, i32) {
    %c0_i32 = arith.constant 0 : i32
    %c0_i32_0 = arith.constant 0 : i32
    %c0_i32_1 = arith.constant 0 : i32
    return %arg0, %c0_i32, %c0_i32_0 : i32, i32, i32
  }
  func.func @transform_1(%arg0: i32) -> (i32, i32) {
    %c0_i32 = arith.constant 0 : i32
    %c0_i32_0 = arith.constant 0 : i32
    %c0_i32_1 = arith.constant 0 : i32
    return %c0_i32, %c0_i32_0 : i32, i32
  }
  func.func @transform_2(%arg0: i32) -> (i32, i32, i32) {
    %c0_i32 = arith.constant 0 : i32
    %c0_i32_0 = arith.constant 0 : i32
    %c0_i32_1 = arith.constant 0 : i32
    return %arg0, %c0_i32, %c0_i32_0 : i32, i32, i32
  }
  func.func @transform_3(%arg0: i32) -> (i32, i32, i32) {
    %c0_i32 = arith.constant 0 : i32
    %c0_i32_0 = arith.constant 0 : i32
    %c0_i32_1 = arith.constant 0 : i32
    return %arg0, %c0_i32, %c0_i32_0 : i32, i32, i32
  }
}

</mosaic_0001>

<bundles_post_ra>
// kernel: gae_forward_decode.1
= control target key start
LH: loop header
LB: loop body
LE: loop exit
PB: predicated region body
PF: predicated region fallthrough
CT: control target
= control target key end

     0   :  { %9 = vsyncpa [#allocation3], 0  ;;  %s2881_s0 = inlined_call_operand.vmem [shape: f32[8,64,16], index: 0, kind: input, shape index: {}]   ;;  %s2882_s1 = inlined_call_operand.vmem [shape: bf16[672,128], index: 1, kind: input, shape index: {}]   ;;  %s2883_s2 = inlined_call_operand.vmem [shape: f32[8,64,48], index: 2, kind: output, shape index: {0}]   ;;  %s2884_s3 = inlined_call_operand.hbm [shape: f32[8,64,64], index: 3, kind: output, shape index: {1}]  }
   0x1   :  { %11 = vsyncpa [#allocation3 + $0x1], 0  ;;  %s2494_s12 = smov 0   ;;  %s2496_s13 = smov 0  }
   0x2   :  { %s2498_s14 = smov 0   ;;  %s2500_s15 = smov 0  }
   0x3 LB: > { %s2515_s16 = sadd.s32 4294967295, %s2469_s15   ;;  %s1676_s17 = sadd.s32 4294967294, %s2469_s15   ;;  %s2469_s15 = sphi %s2500_s15, %s2890_s15   ;;  %s2465_s14 = sphi %s2498_s14, %s2889_s14   ;;  %s2461_s13 = sphi %s2496_s13, %s2888_s13   ;;  %s2457_s12 = sphi %s2494_s12, %s2887_s12  }
   0x4   : > { %s2519_s18 = sadd.s32 1, %s2469_s15   ;;  %s97_s19 = sadd.s32 1, %s2465_s14 }
   0x5   : > { %s94_s20 = ssub.s32 %s2469_s15, %s2519_s18  ;;  %p107_p0 = scmp.ne.s32.totalorder %s2465_s14, %s2461_s13 }
   0x6   : > { %p95_p1 = scmp.eq.s32.totalorder %s94_s20, 0  ;;  %p108_p2 = scmp.eq.s32.totalorder %s2515_s16, 3 }
   0x7   : > { %p113_p3 = scmp.ne.s32.totalorder %s2461_s13, %s2457_s12  ;;  %p114_p4 = scmp.eq.s32.totalorder %s1676_s17, 3 }
   0x8   : > { %s2530_s21 = scalar_select %p95_p1, %s2465_s14, %s97_s19  }
   0x9   : > { %p2532_p5 = por %p108_p2, %p107_p0  ;;  %p2536_p6 = por %p114_p4, %p113_p3 }
   0xa   : > { %p1679_p7 = scmp.ge.s32.totalorder %s2469_s15, 1  ;;  %p145_p8 = scmp.lt.s32.totalorder %s2469_s15, 5 }
   0xc   : > { %p146_p9 = pnand %p1679_p7, %p145_p8 }
   0xd   : > { %v2142_v0 = vld [vmem:[%s2882_s1 + $0x8] sm:$0xff] (!%p146_p9)   ;;  %s1681_s26 = sshll.u32 (!%p146_p9), %s2515_s16, 1  ;;  %v2143_v1 = vld [vmem:[%s2882_s1 + $0x10] sm:$0xff] (!%p146_p9)   ;;  %v2144_v2 = vld [vmem:[%s2882_s1 + $0x18] sm:$0xff] (!%p146_p9)   ;;  %vm230_vm0 = vcmask (!%p146_p9), 130048   ;;  %v220_v37 = vlaneseq (!%p146_p9)  ;;  %vm1301_vm1 = vcmask (!%p146_p9), 392192  }
   0xe   : > { %149 = sbr.rel (%p146_p9) target bundleno = 1689 (0x699), region = 28  ;;  %p177_p10 = scmp.lt.s32.totalorder (!%p146_p9), %s1681_s26, 7  ;;  %1883 = vmatprep.subr.bf16.mxu0 (!%p146_p9), %v2142_v0  ;;  %1901 = vmatprep.subr.bf16.mxu1 (!%p146_p9), %v2143_v1  ;;  %v2145_v3 = vld [vmem:[%s2882_s1 + $0x20] sm:$0xff] (!%p146_p9)   ;;  %v2146_v28 = vld [vmem:[%s2882_s1 + $0x28] sm:$0xff] (!%p146_p9)   ;;  %v2147_v29 = vld [vmem:[%s2882_s1 + $0x30] sm:$0xff] (!%p146_p9)   ;;  %vm1423_vm2 = vcmask (!%p146_p9), 523264  }
   0xf   : > { %1884 = vmatpush3.bf16.msra.mxu0 (!%p146_p9), %v2142_v0  ;;  %1902 = vmatpush3.bf16.msra.mxu1 (!%p146_p9), %v2143_v1  ;;  %v2148_v30 = vld [vmem:[%s2882_s1 + $0x38] sm:$0xff] (!%p146_p9)   ;;  %v2149_v31 = vld [vmem:[%s2882_s1 + $0x40] sm:$0xff] (!%p146_p9)   ;;  %v2150_v32 = vld [vmem:[%s2882_s1 + $0x48] sm:$0xff] (!%p146_p9)   ;;  %v2616_v38 = vshrl.u32 (!%p146_p9), %v220_v37, 7  ;;  %s173_s27 = sand.u32 (!%p146_p9), 1, %s2461_s13   ;;  %s1777_s30 = sshll.u32 (!%p146_p9), %s2515_s16, 11 }
  0x10   : > { %1903 = vmatprep.subr.bf16.mxu1 (!%p146_p9), %v2144_v2  ;;  %v2151_v33 = vld [vmem:[%s2882_s1 + $0x50] sm:$0xff] (!%p146_p9)   ;;  %v2152_v34 = vld [vmem:[%s2882_s1 + $0x58] sm:$0xff] (!%p146_p9)   ;;  %v2153_v35 = vld [vmem:[%s2882_s1 + $0x60] sm:$0xff] (!%p146_p9)   ;;  %s1680_s28 = sshll.u32 (!%p146_p9), %s173_s27, 7  ;;  %s2828_s8 = scalar_lea.hbm (!%p146_p9), %s2884_s3, %s1777_s30 }
  0x11   : > { %1933 = vmatprep.subr.bf16.mxu0 (!%p146_p9), %v2151_v33  ;;  %v2154_v36 = vld [vmem:[%s2882_s1 + $0x68] sm:$0xff] (!%p146_p9)   ;;  %v192_v39 = vld [vmem:[%s2882_s1] sm:$0xf] (!%p146_p9)  ;;  %v222_v41 = vsub.s32 (!%p146_p9), 0, %v2616_v38  ;;  %s2795_s29 = scalar_lea.vmem (!%p146_p9), [#allocation2], %s1680_s28  ;;  %s2840_s16 = scalar_lea.sflag (!%p146_p9), [#allocation3], %s173_s27 }
  0x12   : > { %v2621_v40 = vunpack.c.l.bf16 (!%p146_p9), %v192_v39  ;;  %v2157_v37 = vld [vmem:[%s2882_s1 + $0x80] sm:$0xff] (!%p146_p9)   ;;  %v2158_v39 = vld [vmem:[%s2882_s1 + $0x88] sm:$0xff] (!%p146_p9)   ;;  %s1588_s5 = sshll.u32 (!%p146_p9), %s2795_s29, 4  ;;  %s2471_s10 = smov (!%p146_p9), [#allocation2]   ;;  %s2830_s5 = int_to_ptr.vmem [resolvable:$true] %s1588_s5 }
  0x13   : > { %1904 = vmatpush3.bf16.msra.mxu1 (!%p146_p9), %v2144_v2  ;;  %s2411_s11 = sshll.u32 (!%p146_p9), %s2471_s10, 4  ;;  %s2412_s11 = int_to_ptr.vmem [resolvable:$false] %s2411_s11 }
  0x14   : > { %1905 = vmatprep.subr.bf16.mxu1 (!%p146_p9), %v2145_v3  ;;  %v2625_v42 = vrot.slane (!%p146_p9), %v2621_v40, %v222_v41  ;;  %v2159_v41 = vld [vmem:[%s2882_s1 + $0x90] sm:$0xff] (!%p146_p9)   ;;  %s2413_s17 = scalar_lea.vmem (!%p146_p9), %s2412_s11, 4096  ;;  %p2414_p0 = scmp.lt.s32.totalorder (!%p146_p9), %s2830_s5, %s2412_s11 }
  0x15   : > { %s2892_s26 = smov (!%p177_p10, %s1681_s26), 7 }
  0x16   : > { %s1774_s4 = sshll.u32 %s2892_s26, 6 }
  0x17   : > { %s2563_s9 = scalar_lea.vmem %s2881_s0, %s1774_s4  ;;  %1906 = vmatpush3.bf16.msra.mxu1 %v2145_v3  ;;  %s2638_s25 = scalar_lea.vmem %s2883_s2, %s1774_s4 }
  0x18   : > { %v194_v4 = vld [vmem:[%s2563_s9] sm:$0xff]  ;;  %v195_v5 = vld [vmem:[%s2563_s9 + $0x8] sm:$0xff]  ;;  %v196_v6 = vld [vmem:[%s2563_s9 + $0x10] sm:$0xff]  ;;  %1907 = vmatprep.subr.bf16.mxu1 %v2146_v28 }
  0x19   : > { %v212_v7 = vpack.c.bf16 %v195_v5, %v194_v4  ;;  %v197_v8 = vld [vmem:[%s2563_s9 + $0x18] sm:$0xff]  ;;  %v198_v9 = vld [vmem:[%s2563_s9 + $0x20] sm:$0xff]  ;;  %v199_v10 = vld [vmem:[%s2563_s9 + $0x28] sm:$0xff] }
  0x1a   : > { %v213_v11 = vpack.c.bf16 %v197_v8, %v196_v6  ;;  %v214_v12 = vpack.c.bf16 %v199_v10, %v198_v9  ;;  %v200_v13 = vld [vmem:[%s2563_s9 + $0x30] sm:$0xff]  ;;  %v201_v14 = vld [vmem:[%s2563_s9 + $0x38] sm:$0xff]  ;;  %v202_v15 = vld [vmem:[%s2563_s9 + $0x40] sm:$0xff] }
  0x1b   : > { %1885 = vmatprep.mubr.msk.bf16.mxu0 %vm230_vm0, %v212_v7  ;;  %v203_v16 = vld [vmem:[%s2563_s9 + $0x48] sm:$0xff]  ;;  %v215_v17 = vpack.c.bf16 %v201_v14, %v200_v13  ;;  %v204_v19 = vld [vmem:[%s2563_s9 + $0x50] sm:$0xff]  ;;  %v205_v20 = vld [vmem:[%s2563_s9 + $0x58] sm:$0xff]  ;;  %1908 = vmatpush3.bf16.msra.mxu1 %v2146_v28 }
  0x1c   : > { %1886 = vmatmul.mubr.msk.bf16.vlgmr.msra.gmra.mrb[0].mxu0 %vm230_vm0, %v213_v11  ;;  %v216_v18 = vpack.c.bf16 %v203_v16, %v202_v15  ;;  %v206_v21 = vld [vmem:[%s2563_s9 + $0x60] sm:$0xff]  ;;  %v207_v22 = vld [vmem:[%s2563_s9 + $0x68] sm:$0xff]  ;;  %v217_v23 = vpack.c.bf16 %v205_v20, %v204_v19  ;;  %v208_v25 = vld [vmem:[%s2563_s9 + $0x70] sm:$0xff]  ;;  %1909 = vmatprep.subr.bf16.mxu1 %v2147_v29 }
  0x1d   : > { %1889 = vmatprep.mubr.msk.bf16.mxu0 %vm230_vm0, %v214_v12  ;;  %v218_v24 = vpack.c.bf16 %v207_v22, %v206_v21  ;;  %v209_v26 = vld [vmem:[%s2563_s9 + $0x78] sm:$0xff]  ;;  %1934 = vmatpush3.bf16.msra.mxu0 %v2151_v33  ;;  %s2407_s9 = scalar_lea.vmem %s2830_s5, 2048 }
  0x1e   : > { %v219_v27 = vpack.c.bf16 %v209_v26, %v208_v25  ;;  %1935 = vmatprep.subr.bf16.mxu0 %v2152_v34  ;;  %p2408_p11 = scmp.ne.s32.totalorder %s2830_s5, %s2407_s9  ;;  %p2415_p1 = scmp.lt.s32.totalorder %s2413_s17, %s2407_s9 }
  0x1f   : > { %1910 = vmatpush3.bf16.msra.mxu1 %v2147_v29 }
  0x20   : > { %1911 = vmatprep.subr.bf16.mxu1 %v2148_v30  ;;  %p2409_p12 = pnand %p2408_p11, %p2532_p5  ;;  %p2416_p2 = por %p2415_p1, %p2414_p0 }
  0x21   : > { %1936 = vmatpush3.bf16.msra.mxu0 %v2152_v34 }
  0x22   : > { %1937 = vmatprep.subr.bf16.mxu0 %v2153_v35  ;;  %p2410_p13 = pneg %p2409_p12 }
  0x23   : > { %1912 = vmatpush3.bf16.msra.mxu1 %v2148_v30 }
  0x24   : > { %1890 = vmatmul.mubr.msk.bf16.gmra.mrb[4].mxu0 %vm230_vm0, %v215_v17  ;;  %1913 = vmatprep.subr.bf16.mxu1 %v2149_v31  ;;  %p2417_p3 = pnand %p2416_p2, %p2410_p13 }
  0x25   : > { %1893 = vmatprep.mubr.msk.bf16.mxu0 %vm230_vm0, %v216_v18  ;;  %1938 = vmatpush3.bf16.msra.mxu0 %v2153_v35  ;;  %v2155_v35 = vld [vmem:[%s2882_s1 + $0x70] sm:$0xff]  }
  0x26   : > { %1939 = vmatprep.subr.bf16.mxu0 %v2154_v36 }
  0x27   : > { %1914 = vmatpush3.bf16.msra.mxu1 %v2149_v31 }
  0x28   : > { %1915 = vmatprep.subr.bf16.mxu1 %v2150_v32 }
  0x29   : > { %1940 = vmatpush3.bf16.msra.mxu0 %v2154_v36  ;;  %v2156_v36 = vld [vmem:[%s2882_s1 + $0x78] sm:$0xff]  }
  0x2a   : > { %1941 = vmatprep.subr.bf16.mxu0 %v2155_v35 }
  0x2b   : > { %1916 = vmatpush3.bf16.msra.mxu1 %v2150_v32 }
  0x2c   : > { %1894 = vmatmul.mubr.msk.bf16.gmra.mrb[8].mxu0 %vm230_vm0, %v217_v23  ;;  %1965 = vmatprep.subr.bf16.mxu1 %v2159_v41 }
  0x2d   : > { %1897 = vmatprep.mubr.msk.bf16.mxu0 %vm230_vm0, %v218_v24  ;;  %1942 = vmatpush3.bf16.msra.mxu0 %v2155_v35 }
  0x2e   : > { %1943 = vmatprep.subr.bf16.mxu0 %v2156_v36 }
  0x31   : > { %1944 = vmatpush3.bf16.msra.mxu0 %v2156_v36 }
  0x32   : > { %1945 = vmatprep.subr.bf16.mxu0 %v2157_v37 }
  0x34   : > { %1898 = vmatmul.mubr.msk.bf16.gmra.mrb[12].mxu0 %vm230_vm0, %v219_v27 }
  0x35   : > { %1946 = vmatpush3.bf16.msra.mxu0 %v2157_v37 }
  0x36   : > { %1947 = vmatprep.subr.bf16.mxu0 %v2158_v39 }
  0x39   : > { %1948 = vmatpush3.bf16.msra.mxu0 %v2158_v39 }
  0xef   : > { %v1887_v43 = vpop.f32.mrb[0].mxu0 }
  0xf0   : > { %v298_v44 = vadd.f32 %v1887_v43, %v2625_v42  ;;  %v289_v45 = vpop.f32.mrb[1].mxu0  ;;  %v2161_v43 = vld [vmem:[%s2882_s1 + $0xa0] sm:$0xff]  }
  0xf1   : > { %v290_v46 = vadd.f32 %v289_v45, %v2625_v42  ;;  %v1888_v47 = vpop.f32.mrb[2].mxu0  ;;  %v394_v45 = vsub.s32 1, %v2616_v38 }
  0xf2   : > { %2183 = vtanh.f32 %v298_v44  ;;  %v301_v48 = vadd.f32 %v1888_v47, %v2625_v42  ;;  %v292_v49 = vpop.f32.mrb[3].mxu0  ;;  %v2162_v44 = vld [vmem:[%s2882_s1 + $0xa8] sm:$0xff]  }
  0xf3   : > { %2185 = vtanh.f32 %v290_v46  ;;  %v293_v50 = vadd.f32 %v292_v49, %v2625_v42  ;;  %v395_v46 = vrot.slane %v2621_v40, %v394_v45  ;;  %v2167_v45 = vld [vmem:[%s2882_s1 + $0xd0] sm:$0xff]  }
  0xf4   : > { %2187 = vtanh.f32 %v301_v48  ;;  %1997 = vmatprep.subr.bf16.mxu0 %v2167_v45 }
  0xf5   : > { %2189 = vtanh.f32 %v293_v50 }
  0xf7   : > { %v1891_v51 = vpop.f32.mrb[4].mxu0 }
  0xf8   : > { %v314_v52 = vadd.f32 %v1891_v51, %v2625_v42  ;;  %v305_v53 = vpop.f32.mrb[5].mxu0 }
  0xf9   : > { %v306_v54 = vadd.f32 %v305_v53, %v2625_v42  ;;  %v1892_v55 = vpop.f32.mrb[6].mxu0 }
  0xfa   : > { %2191 = vtanh.f32 %v314_v52  ;;  %v317_v56 = vadd.f32 %v1892_v55, %v2625_v42  ;;  %v308_v57 = vpop.f32.mrb[7].mxu0 }
  0xfb   : > { %2193 = vtanh.f32 %v306_v54  ;;  %v309_v58 = vadd.f32 %v308_v57, %v2625_v42 }
  0xfc   : > { %v2184_v59 = vpop.eup %2183  ;;  %2195 = vtanh.f32 %v317_v56 }
  0xfd   : > { %v2186_v60 = vpop.eup %2185  ;;  %1304 = vst.msk [vmem:[%s2638_s25 + $0x10] sm:$0xff] %vm1301_vm1, %v2184_v59  ;;  %2197 = vtanh.f32 %v309_v58 }
  0xfe   : > { %v2188_v61 = vpop.eup %2187  ;;  %1302 = vst.msk [vmem:[%s2638_s25] sm:$0xff] %vm1301_vm1, %v2186_v60 }
  0xff   : > { %v2190_v62 = vpop.eup %2189  ;;  %1305 = vst.msk [vmem:[%s2638_s25 + $0x18] sm:$0xff] %vm1301_vm1, %v2188_v61  ;;  %v1895_v63 = vpop.f32.mrb[8].mxu0  ;;  %v385_v0 = vpack.c.bf16 %v2188_v61, %v2184_v59 }
 0x100   : > { %1303 = vst.msk [vmem:[%s2638_s25 + $0x8] sm:$0xff] %vm1301_vm1, %v2190_v62  ;;  %v330_v1 = vadd.f32 %v1895_v63, %v2625_v42  ;;  %v321_v2 = vpop.f32.mrb[9].mxu0  ;;  %v384_v3 = vpack.c.bf16 %v2190_v62, %v2186_v60 }
 0x101   : > { %v322_v4 = vadd.f32 %v321_v2, %v2625_v42  ;;  %v1896_v5 = vpop.f32.mrb[10].mxu0 }
 0x102   : > { %2199 = vtanh.f32 %v330_v1  ;;  %v333_v6 = vadd.f32 %v1896_v5, %v2625_v42  ;;  %v324_v7 = vpop.f32.mrb[11].mxu0  ;;  %1917 = vmatprep.mubr.bf16.mxu1 %v384_v3 }
 0x103   : > { %2201 = vtanh.f32 %v322_v4  ;;  %v325_v8 = vadd.f32 %v324_v7, %v2625_v42  ;;  %1918 = vmatmul.mubr.bf16.vlgmr.msra.gmra.mrb[0].mxu1 %v385_v0 }
 0x104   : > { %v2192_v9 = vpop.eup %2191  ;;  %2203 = vtanh.f32 %v333_v6  ;;  %1966 = vmatpush3.bf16.msra.mxu1 %v2159_v41  ;;  %v2163_v41 = vld [vmem:[%s2882_s1 + $0xb0] sm:$0xff]  }
 0x105   : > { %v2194_v10 = vpop.eup %2193  ;;  %1308 = vst.msk [vmem:[%s2638_s25 + $0x30] sm:$0xff] %vm1301_vm1, %v2192_v9  ;;  %2205 = vtanh.f32 %v325_v8 }
 0x106   : > { %v2196_v11 = vpop.eup %2195  ;;  %1306 = vst.msk [vmem:[%s2638_s25 + $0x20] sm:$0xff] %vm1301_vm1, %v2194_v10 }
 0x107   : > { %v2198_v12 = vpop.eup %2197  ;;  %1309 = vst.msk [vmem:[%s2638_s25 + $0x38] sm:$0xff] %vm1301_vm1, %v2196_v11  ;;  %v1899_v13 = vpop.f32.mrb[12].mxu0  ;;  %v387_v14 = vpack.c.bf16 %v2196_v11, %v2192_v9 }
 0x108   : > { %1307 = vst.msk [vmem:[%s2638_s25 + $0x28] sm:$0xff] %vm1301_vm1, %v2198_v12  ;;  %v346_v15 = vadd.f32 %v1899_v13, %v2625_v42  ;;  %v337_v16 = vpop.f32.mrb[13].mxu0  ;;  %v386_v17 = vpack.c.bf16 %v2198_v12, %v2194_v10 }
 0x109   : > { %v338_v18 = vadd.f32 %v337_v16, %v2625_v42  ;;  %v1900_v19 = vpop.f32.mrb[14].mxu0 }
 0x10a   : > { %2207 = vtanh.f32 %v346_v15  ;;  %v349_v20 = vadd.f32 %v1900_v19, %v2625_v42  ;;  %v340_v21 = vpop.f32.mrb[15].mxu0  ;;  %1921 = vmatprep.mubr.bf16.mxu1 %v386_v17 }
 0x10b   : > { %2209 = vtanh.f32 %v338_v18  ;;  %v341_v22 = vadd.f32 %v340_v21, %v2625_v42  ;;  %1922 = vmatmul.mubr.bf16.gmra.mrb[4].mxu1 %v387_v14  ;;  %v2160_v42 = vld [vmem:[%s2882_s1 + $0x98] sm:$0xff]  }
 0x10c   : > { %v2200_v23 = vpop.eup %2199  ;;  %2211 = vtanh.f32 %v349_v20  ;;  %1967 = vmatprep.subr.bf16.mxu1 %v2160_v42 }
 0x10d   : > { %v2202_v24 = vpop.eup %2201  ;;  %1746 = vst.msk [vmem:[%s2638_s25 + $0x50] sm:$0xff] %vm1301_vm1, %v2200_v23  ;;  %2213 = vtanh.f32 %v341_v22  ;;  %1968 = vmatpush3.bf16.msra.mxu1 %v2160_v42  ;;  %v2164_v42 = vld [vmem:[%s2882_s1 + $0xb8] sm:$0xff]  }
 0x10e   : > { %v2204_v25 = vpop.eup %2203  ;;  %1744 = vst.msk [vmem:[%s2638_s25 + $0x40] sm:$0xff] %vm1301_vm1, %v2202_v24  ;;  %1969 = vmatprep.subr.bf16.mxu1 %v2161_v43 }
 0x10f   : > { %v2206_v26 = vpop.eup %2205  ;;  %1747 = vst.msk [vmem:[%s2638_s25 + $0x58] sm:$0xff] %vm1301_vm1, %v2204_v25  ;;  %v389_v27 = vpack.c.bf16 %v2204_v25, %v2200_v23 }
 0x110   : > { %1745 = vst.msk [vmem:[%s2638_s25 + $0x48] sm:$0xff] %vm1301_vm1, %v2206_v26  ;;  %v388_v28 = vpack.c.bf16 %v2206_v26, %v2202_v24 }
 0x111   : > { %1970 = vmatpush3.bf16.msra.mxu1 %v2161_v43  ;;  %v2165_v43 = vld [vmem:[%s2882_s1 + $0xc0] sm:$0xff]  }
 0x112   : > { %1925 = vmatprep.mubr.bf16.mxu1 %v388_v28  ;;  %1971 = vmatprep.subr.bf16.mxu1 %v2162_v44 }
 0x113   : > { %1926 = vmatmul.mubr.bf16.gmra.mrb[8].mxu1 %v389_v27 }
 0x114   : > { %v2208_v29 = vpop.eup %2207 }
 0x115   : > { %v2210_v30 = vpop.eup %2209  ;;  %1750 = vst.msk [vmem:[%s2638_s25 + $0x70] sm:$0xff] %vm1301_vm1, %v2208_v29  ;;  %1972 = vmatpush3.bf16.msra.mxu1 %v2162_v44  ;;  %v2166_v44 = vld [vmem:[%s2882_s1 + $0xc8] sm:$0xff]  }
 0x116   : > { %v2212_v31 = vpop.eup %2211  ;;  %1748 = vst.msk [vmem:[%s2638_s25 + $0x60] sm:$0xff] %vm1301_vm1, %v2210_v30  ;;  %1973 = vmatprep.subr.bf16.mxu1 %v2163_v41 }
 0x117   : > { %v2214_v32 = vpop.eup %2213  ;;  %1751 = vst.msk [vmem:[%s2638_s25 + $0x78] sm:$0xff] %vm1301_vm1, %v2212_v31  ;;  %v391_v33 = vpack.c.bf16 %v2212_v31, %v2208_v29 }
 0x118   : > { %1749 = vst.msk [vmem:[%s2638_s25 + $0x68] sm:$0xff] %vm1301_vm1, %v2214_v32  ;;  %v390_v34 = vpack.c.bf16 %v2214_v32, %v2210_v30 }
 0x119   : > { %1974 = vmatpush3.bf16.msra.mxu1 %v2163_v41 }
 0x11a   : > { %1929 = vmatprep.mubr.bf16.mxu1 %v390_v34  ;;  %1975 = vmatprep.subr.bf16.mxu1 %v2164_v42 }
 0x11b   : > { %1930 = vmatmul.mubr.bf16.gmra.mrb[12].mxu1 %v391_v33 }
 0x11d   : > { %1976 = vmatpush3.bf16.msra.mxu1 %v2164_v42 }
 0x11e   : > { %1977 = vmatprep.subr.bf16.mxu1 %v2165_v43 }
 0x121   : > { %1978 = vmatpush3.bf16.msra.mxu1 %v2165_v43 }
 0x122   : > { %1979 = vmatprep.subr.bf16.mxu1 %v2166_v44 }
 0x125   : > { %1980 = vmatpush3.bf16.msra.mxu1 %v2166_v44 }
 0x1d6   : > { %v1919_v47 = vpop.f32.mrb[0].mxu1 }
 0x1d7   : > { %v487_v48 = vadd.f32 %v1919_v47, %v395_v46  ;;  %v478_v49 = vpop.f32.mrb[1].mxu1  ;;  %v2169_v47 = vld [vmem:[%s2882_s1 + $0xe0] sm:$0xff]  }
 0x1d8   : > { %v479_v50 = vadd.f32 %v478_v49, %v395_v46  ;;  %v1920_v51 = vpop.f32.mrb[2].mxu1  ;;  %v583_v49 = vsub.s32 2, %v2616_v38 }
 0x1d9   : > { %2215 = vtanh.f32 %v487_v48  ;;  %v490_v52 = vadd.f32 %v1920_v51, %v395_v46  ;;  %v481_v53 = vpop.f32.mrb[3].mxu1  ;;  %v2170_v48 = vld [vmem:[%s2882_s1 + $0xe8] sm:$0xff]  }
 0x1da   : > { %2217 = vtanh.f32 %v479_v50  ;;  %v482_v54 = vadd.f32 %v481_v53, %v395_v46  ;;  %v584_v50 = vrot.slane %v2621_v40, %v583_v49  ;;  %v2175_v49 = vld [vmem:[%s2882_s1 + $0x110] sm:$0xff]  }
 0x1db   : > { %2219 = vtanh.f32 %v490_v52  ;;  %2029 = vmatprep.subr.bf16.mxu1 %v2175_v49 }
 0x1dc   : > { %2221 = vtanh.f32 %v482_v54 }
 0x1de   : > { %v1923_v55 = vpop.f32.mrb[4].mxu1 }
 0x1df   : > { %v503_v56 = vadd.f32 %v1923_v55, %v395_v46  ;;  %v494_v57 = vpop.f32.mrb[5].mxu1 }
 0x1e0   : > { %v495_v58 = vadd.f32 %v494_v57, %v395_v46  ;;  %v1924_v59 = vpop.f32.mrb[6].mxu1 }
 0x1e1   : > { %2223 = vtanh.f32 %v503_v56  ;;  %v506_v60 = vadd.f32 %v1924_v59, %v395_v46  ;;  %v497_v61 = vpop.f32.mrb[7].mxu1 }
 0x1e2   : > { %2225 = vtanh.f32 %v495_v58  ;;  %v498_v62 = vadd.f32 %v497_v61, %v395_v46 }
 0x1e3   : > { %v2216_v63 = vpop.eup %2215  ;;  %2227 = vtanh.f32 %v506_v60 }
 0x1e4   : > { %v2218_v0 = vpop.eup %2217  ;;  %2229 = vtanh.f32 %v498_v62 }
 0x1e5   : > { %v2220_v1 = vpop.eup %2219 }
 0x1e6   : > { %v2222_v2 = vpop.eup %2221  ;;  %v1927_v3 = vpop.f32.mrb[8].mxu1  ;;  %v574_v4 = vpack.c.bf16 %v2220_v1, %v2216_v63 }
 0x1e7   : > { %v519_v5 = vadd.f32 %v1927_v3, %v395_v46  ;;  %v510_v6 = vpop.f32.mrb[9].mxu1  ;;  %v573_v7 = vpack.c.bf16 %v2222_v2, %v2218_v0 }
 0x1e8   : > { %v511_v8 = vadd.f32 %v510_v6, %v395_v46  ;;  %v1928_v9 = vpop.f32.mrb[10].mxu1 }
 0x1e9   : > { %2231 = vtanh.f32 %v519_v5  ;;  %v522_v10 = vadd.f32 %v1928_v9, %v395_v46  ;;  %v513_v11 = vpop.f32.mrb[11].mxu1  ;;  %1949 = vmatprep.mubr.bf16.mxu0 %v573_v7 }
 0x1ea   : > { %2233 = vtanh.f32 %v511_v8  ;;  %v514_v12 = vadd.f32 %v513_v11, %v395_v46  ;;  %1950 = vmatmul.mubr.bf16.vlgmr.msra.gmra.mrb[16].mxu0 %v574_v4 }
 0x1eb   : > { %v2224_v13 = vpop.eup %2223  ;;  %2235 = vtanh.f32 %v522_v10  ;;  %1998 = vmatpush3.bf16.msra.mxu0 %v2167_v45  ;;  %v2171_v45 = vld [vmem:[%s2882_s1 + $0xf0] sm:$0xff]  }
 0x1ec   : > { %v2226_v14 = vpop.eup %2225  ;;  %2237 = vtanh.f32 %v514_v12 }
 0x1ed   : > { %v2228_v15 = vpop.eup %2227 }
 0x1ee   : > { %v2230_v16 = vpop.eup %2229  ;;  %v1931_v17 = vpop.f32.mrb[12].mxu1  ;;  %v576_v18 = vpack.c.bf16 %v2228_v15, %v2224_v13 }
 0x1ef   : > { %v535_v19 = vadd.f32 %v1931_v17, %v395_v46  ;;  %v526_v20 = vpop.f32.mrb[13].mxu1  ;;  %v575_v21 = vpack.c.bf16 %v2230_v16, %v2226_v14 }
 0x1f0   : > { %v527_v22 = vadd.f32 %v526_v20, %v395_v46  ;;  %v1932_v23 = vpop.f32.mrb[14].mxu1 }
 0x1f1   : > { %2239 = vtanh.f32 %v535_v19  ;;  %v538_v24 = vadd.f32 %v1932_v23, %v395_v46  ;;  %v529_v25 = vpop.f32.mrb[15].mxu1  ;;  %1953 = vmatprep.mubr.bf16.mxu0 %v575_v21 }
 0x1f2   : > { %2241 = vtanh.f32 %v527_v22  ;;  %v530_v26 = vadd.f32 %v529_v25, %v395_v46  ;;  %1954 = vmatmul.mubr.bf16.gmra.mrb[20].mxu0 %v576_v18  ;;  %v2168_v46 = vld [vmem:[%s2882_s1 + $0xd8] sm:$0xff]  }
 0x1f3   : > { %v2232_v27 = vpop.eup %2231  ;;  %2243 = vtanh.f32 %v538_v24  ;;  %1999 = vmatprep.subr.bf16.mxu0 %v2168_v46 }
 0x1f4   : > { %v2234_v28 = vpop.eup %2233  ;;  %2245 = vtanh.f32 %v530_v26  ;;  %2000 = vmatpush3.bf16.msra.mxu0 %v2168_v46  ;;  %v2172_v46 = vld [vmem:[%s2882_s1 + $0xf8] sm:$0xff]  }
 0x1f5   : > { %v2236_v29 = vpop.eup %2235  ;;  %2001 = vmatprep.subr.bf16.mxu0 %v2169_v47 }
 0x1f6   : > { %v2238_v30 = vpop.eup %2237  ;;  %v578_v31 = vpack.c.bf16 %v2236_v29, %v2232_v27 }
 0x1f7   : > { %v577_v32 = vpack.c.bf16 %v2238_v30, %v2234_v28 }
 0x1f8   : > { %2002 = vmatpush3.bf16.msra.mxu0 %v2169_v47  ;;  %v2173_v47 = vld [vmem:[%s2882_s1 + $0x100] sm:$0xff]  }
 0x1f9   : > { %1957 = vmatprep.mubr.bf16.mxu0 %v577_v32  ;;  %2003 = vmatprep.subr.bf16.mxu0 %v2170_v48 }
 0x1fa   : > { %1958 = vmatmul.mubr.bf16.gmra.mrb[24].mxu0 %v578_v31 }
 0x1fb   : > { %v2240_v33 = vpop.eup %2239 }
 0x1fc   : > { %v2242_v34 = vpop.eup %2241  ;;  %2004 = vmatpush3.bf16.msra.mxu0 %v2170_v48  ;;  %v2174_v48 = vld [vmem:[%s2882_s1 + $0x108] sm:$0xff]  }
 0x1fd   : > { %v2244_v35 = vpop.eup %2243  ;;  %2005 = vmatprep.subr.bf16.mxu0 %v2171_v45 }
 0x1fe   : > { %v2246_v36 = vpop.eup %2245  ;;  %v580_v37 = vpack.c.bf16 %v2244_v35, %v2240_v33 }
 0x1ff   : > { %v579_v39 = vpack.c.bf16 %v2246_v36, %v2242_v34 }
 0x200   : > { %2006 = vmatpush3.bf16.msra.mxu0 %v2171_v45 }
 0x201   : > { %1961 = vmatprep.mubr.bf16.mxu0 %v579_v39  ;;  %2007 = vmatprep.subr.bf16.mxu0 %v2172_v46 }
 0x202   : > { %1962 = vmatmul.mubr.bf16.gmra.mrb[28].mxu0 %v580_v37 }
 0x204   : > { %2008 = vmatpush3.bf16.msra.mxu0 %v2172_v46 }
 0x205   : > { %2009 = vmatprep.subr.bf16.mxu0 %v2173_v47 }
 0x208   : > { %2010 = vmatpush3.bf16.msra.mxu0 %v2173_v47 }
 0x209   : > { %2011 = vmatprep.subr.bf16.mxu0 %v2174_v48 }
 0x20c   : > { %2012 = vmatpush3.bf16.msra.mxu0 %v2174_v48 }
 0x2bd   : > { %v1951_v51 = vpop.f32.mrb[16].mxu0 }
 0x2be   : > { %v676_v52 = vadd.f32 %v1951_v51, %v584_v50  ;;  %v667_v53 = vpop.f32.mrb[17].mxu0  ;;  %v2177_v51 = vld [vmem:[%s2882_s1 + $0x120] sm:$0xff]  }
 0x2bf   : > { %v668_v54 = vadd.f32 %v667_v53, %v584_v50  ;;  %v1952_v55 = vpop.f32.mrb[18].mxu0  ;;  %v772_v53 = vsub.s32 3, %v2616_v38 }
 0x2c0   : > { %2247 = vtanh.f32 %v676_v52  ;;  %v679_v56 = vadd.f32 %v1952_v55, %v584_v50  ;;  %v670_v57 = vpop.f32.mrb[19].mxu0  ;;  %v2178_v52 = vld [vmem:[%s2882_s1 + $0x128] sm:$0xff]  }
 0x2c1   : > { %2249 = vtanh.f32 %v668_v54  ;;  %v671_v58 = vadd.f32 %v670_v57, %v584_v50  ;;  %v773_v54 = vrot.slane %v2621_v40, %v772_v53  ;;  %v961_v53 = vsub.s32 4, %v2616_v38 }
 0x2c2   : > { %2251 = vtanh.f32 %v679_v56 }
 0x2c3   : > { %2253 = vtanh.f32 %v671_v58 }
 0x2c5   : > { %v1955_v59 = vpop.f32.mrb[20].mxu0 }
 0x2c6   : > { %v692_v60 = vadd.f32 %v1955_v59, %v584_v50  ;;  %v683_v61 = vpop.f32.mrb[21].mxu0 }
 0x2c7   : > { %v684_v62 = vadd.f32 %v683_v61, %v584_v50  ;;  %v1956_v63 = vpop.f32.mrb[22].mxu0 }
 0x2c8   : > { %2255 = vtanh.f32 %v692_v60  ;;  %v695_v0 = vadd.f32 %v1956_v63, %v584_v50  ;;  %v686_v1 = vpop.f32.mrb[23].mxu0 }
 0x2c9   : > { %2257 = vtanh.f32 %v684_v62  ;;  %v687_v2 = vadd.f32 %v686_v1, %v584_v50 }
 0x2ca   : > { %v2248_v3 = vpop.eup %2247  ;;  %2259 = vtanh.f32 %v695_v0 }
 0x2cb   : > { %v2250_v4 = vpop.eup %2249  ;;  %2261 = vtanh.f32 %v687_v2 }
 0x2cc   : > { %v2252_v5 = vpop.eup %2251 }
 0x2cd   : > { %v2254_v6 = vpop.eup %2253  ;;  %v1959_v7 = vpop.f32.mrb[24].mxu0  ;;  %v763_v8 = vpack.c.bf16 %v2252_v5, %v2248_v3 }
 0x2ce   : > { %v708_v9 = vadd.f32 %v1959_v7, %v584_v50  ;;  %v699_v10 = vpop.f32.mrb[25].mxu0  ;;  %v762_v11 = vpack.c.bf16 %v2254_v6, %v2250_v4 }
 0x2cf   : > { %v700_v12 = vadd.f32 %v699_v10, %v584_v50  ;;  %v1960_v13 = vpop.f32.mrb[26].mxu0 }
 0x2d0   : > { %2263 = vtanh.f32 %v708_v9  ;;  %v711_v14 = vadd.f32 %v1960_v13, %v584_v50  ;;  %v702_v15 = vpop.f32.mrb[27].mxu0  ;;  %1981 = vmatprep.mubr.bf16.mxu1 %v762_v11 }
 0x2d1   : > { %2265 = vtanh.f32 %v700_v12  ;;  %v703_v16 = vadd.f32 %v702_v15, %v584_v50  ;;  %1982 = vmatmul.mubr.bf16.vlgmr.msra.gmra.mrb[16].mxu1 %v763_v8 }
 0x2d2   : > { %v2256_v17 = vpop.eup %2255  ;;  %2267 = vtanh.f32 %v711_v14  ;;  %2030 = vmatpush3.bf16.msra.mxu1 %v2175_v49  ;;  %v2179_v49 = vld [vmem:[%s2882_s1 + $0x130] sm:$0xff]  }
 0x2d3   : > { %v2258_v18 = vpop.eup %2257  ;;  %2269 = vtanh.f32 %v703_v16 }
 0x2d4   : > { %v2260_v19 = vpop.eup %2259 }
 0x2d5   : > { %v2262_v20 = vpop.eup %2261  ;;  %v1963_v21 = vpop.f32.mrb[28].mxu0  ;;  %v765_v22 = vpack.c.bf16 %v2260_v19, %v2256_v17 }
 0x2d6   : > { %v724_v23 = vadd.f32 %v1963_v21, %v584_v50  ;;  %v715_v24 = vpop.f32.mrb[29].mxu0  ;;  %v764_v25 = vpack.c.bf16 %v2262_v20, %v2258_v18 }
 0x2d7   : > { %v716_v26 = vadd.f32 %v715_v24, %v584_v50  ;;  %v1964_v27 = vpop.f32.mrb[30].mxu0 }
 0x2d8   : > { %2271 = vtanh.f32 %v724_v23  ;;  %v727_v28 = vadd.f32 %v1964_v27, %v584_v50  ;;  %v718_v29 = vpop.f32.mrb[31].mxu0  ;;  %1985 = vmatprep.mubr.bf16.mxu1 %v764_v25 }
 0x2d9   : > { %2273 = vtanh.f32 %v716_v26  ;;  %v719_v30 = vadd.f32 %v718_v29, %v584_v50  ;;  %1986 = vmatmul.mubr.bf16.gmra.mrb[20].mxu1 %v765_v22  ;;  %v2176_v50 = vld [vmem:[%s2882_s1 + $0x118] sm:$0xff]  }
 0x2da   : > { %v2264_v31 = vpop.eup %2263  ;;  %2275 = vtanh.f32 %v727_v28  ;;  %2031 = vmatprep.subr.bf16.mxu1 %v2176_v50 }
 0x2db   : > { %v2266_v32 = vpop.eup %2265  ;;  %2277 = vtanh.f32 %v719_v30  ;;  %2032 = vmatpush3.bf16.msra.mxu1 %v2176_v50  ;;  %v2180_v50 = vld [vmem:[%s2882_s1 + $0x138] sm:$0xff]  }
 0x2dc   : > { %v2268_v33 = vpop.eup %2267  ;;  %2033 = vmatprep.subr.bf16.mxu1 %v2177_v51 }
 0x2dd   : > { %v2270_v34 = vpop.eup %2269  ;;  %v767_v35 = vpack.c.bf16 %v2268_v33, %v2264_v31 }
 0x2de   : > { %v766_v36 = vpack.c.bf16 %v2270_v34, %v2266_v32 }
 0x2df   : > { %2034 = vmatpush3.bf16.msra.mxu1 %v2177_v51  ;;  %v2181_v51 = vld [vmem:[%s2882_s1 + $0x140] sm:$0xff]  }
 0x2e0   : > { %1989 = vmatprep.mubr.bf16.mxu1 %v766_v36  ;;  %2035 = vmatprep.subr.bf16.mxu1 %v2178_v52 }
 0x2e1   : > { %1990 = vmatmul.mubr.bf16.gmra.mrb[24].mxu1 %v767_v35 }
 0x2e2   : > { %v2272_v37 = vpop.eup %2271 }
 0x2e3   : > { %v2274_v39 = vpop.eup %2273  ;;  %2036 = vmatpush3.bf16.msra.mxu1 %v2178_v52  ;;  %v2182_v52 = vld [vmem:[%s2882_s1 + $0x148] sm:$0xff]  }
 0x2e4   : > { %v2276_v41 = vpop.eup %2275  ;;  %2037 = vmatprep.subr.bf16.mxu1 %v2179_v49 }
 0x2e5   : > { %v2278_v42 = vpop.eup %2277  ;;  %v769_v43 = vpack.c.bf16 %v2276_v41, %v2272_v37 }
 0x2e6   : > { %v768_v44 = vpack.c.bf16 %v2278_v42, %v2274_v39 }
 0x2e7   : > { %2038 = vmatpush3.bf16.msra.mxu1 %v2179_v49 }
 0x2e8   : > { %1993 = vmatprep.mubr.bf16.mxu1 %v768_v44  ;;  %2039 = vmatprep.subr.bf16.mxu1 %v2180_v50 }
 0x2e9   : > { %1994 = vmatmul.mubr.bf16.gmra.mrb[28].mxu1 %v769_v43 }
 0x2eb   : > { %2040 = vmatpush3.bf16.msra.mxu1 %v2180_v50 }
 0x2ec   : > { %2041 = vmatprep.subr.bf16.mxu1 %v2181_v51 }
 0x2ef   : > { %2042 = vmatpush3.bf16.msra.mxu1 %v2181_v51 }
 0x2f0   : > { %2043 = vmatprep.subr.bf16.mxu1 %v2182_v52 }
 0x2f3   : > { %2044 = vmatpush3.bf16.msra.mxu1 %v2182_v52 }
 0x3a4   : > { %v1983_v55 = vpop.f32.mrb[16].mxu1 }
 0x3a5   : > { %v865_v56 = vadd.f32 %v1983_v55, %v773_v54  ;;  %v856_v57 = vpop.f32.mrb[17].mxu1 }
 0x3a6   : > { %v857_v58 = vadd.f32 %v856_v57, %v773_v54  ;;  %v1984_v59 = vpop.f32.mrb[18].mxu1 }
 0x3a7   : > { %2279 = vtanh.f32 %v865_v56  ;;  %v868_v60 = vadd.f32 %v1984_v59, %v773_v54  ;;  %v859_v61 = vpop.f32.mrb[19].mxu1 }
 0x3a8   : > { %2281 = vtanh.f32 %v857_v58  ;;  %v860_v62 = vadd.f32 %v859_v61, %v773_v54 }
 0x3a9   : > { %2283 = vtanh.f32 %v868_v60 }
 0x3aa   : > { %2285 = vtanh.f32 %v860_v62 }
 0x3ac   : > { %v1987_v63 = vpop.f32.mrb[20].mxu1 }
 0x3ad   : > { %v881_v0 = vadd.f32 %v1987_v63, %v773_v54  ;;  %v872_v1 = vpop.f32.mrb[21].mxu1 }
 0x3ae   : > { %v873_v2 = vadd.f32 %v872_v1, %v773_v54  ;;  %v1988_v3 = vpop.f32.mrb[22].mxu1 }
 0x3af   : > { %2287 = vtanh.f32 %v881_v0  ;;  %v884_v4 = vadd.f32 %v1988_v3, %v773_v54  ;;  %v875_v5 = vpop.f32.mrb[23].mxu1 }
 0x3b0   : > { %2289 = vtanh.f32 %v873_v2  ;;  %v876_v6 = vadd.f32 %v875_v5, %v773_v54 }
 0x3b1   : > { %v2280_v7 = vpop.eup %2279  ;;  %2291 = vtanh.f32 %v884_v4 }
 0x3b2   : > { %v2282_v8 = vpop.eup %2281  ;;  %2293 = vtanh.f32 %v876_v6 }
 0x3b3   : > { %v2284_v9 = vpop.eup %2283 }
 0x3b4   : > { %v2286_v10 = vpop.eup %2285  ;;  %v1991_v11 = vpop.f32.mrb[24].mxu1  ;;  %v952_v12 = vpack.c.bf16 %v2284_v9, %v2280_v7 }
 0x3b5   : > { %v897_v13 = vadd.f32 %v1991_v11, %v773_v54  ;;  %v888_v14 = vpop.f32.mrb[25].mxu1  ;;  %v951_v15 = vpack.c.bf16 %v2286_v10, %v2282_v8 }
 0x3b6   : > { %v889_v16 = vadd.f32 %v888_v14, %v773_v54  ;;  %v1992_v17 = vpop.f32.mrb[26].mxu1 }
 0x3b7   : > { %2295 = vtanh.f32 %v897_v13  ;;  %v900_v18 = vadd.f32 %v1992_v17, %v773_v54  ;;  %v891_v19 = vpop.f32.mrb[27].mxu1  ;;  %2013 = vmatprep.mubr.bf16.mxu0 %v951_v15 }
 0x3b8   : > { %2297 = vtanh.f32 %v889_v16  ;;  %v892_v20 = vadd.f32 %v891_v19, %v773_v54  ;;  %2014 = vmatmul.mubr.bf16.vlgmr.msra.gmra.mrb[32].mxu0 %v952_v12 }
 0x3b9   : > { %v2288_v21 = vpop.eup %2287  ;;  %2299 = vtanh.f32 %v900_v18 }
 0x3ba   : > { %v2290_v22 = vpop.eup %2289  ;;  %2301 = vtanh.f32 %v892_v20 }
 0x3bb   : > { %v2292_v23 = vpop.eup %2291 }
 0x3bc   : > { %v2294_v24 = vpop.eup %2293  ;;  %v1995_v25 = vpop.f32.mrb[28].mxu1  ;;  %v954_v26 = vpack.c.bf16 %v2292_v23, %v2288_v21 }
 0x3bd   : > { %v913_v27 = vadd.f32 %v1995_v25, %v773_v54  ;;  %v904_v28 = vpop.f32.mrb[29].mxu1  ;;  %v953_v29 = vpack.c.bf16 %v2294_v24, %v2290_v22 }
 0x3be   : > { %v905_v30 = vadd.f32 %v904_v28, %v773_v54  ;;  %v1996_v31 = vpop.f32.mrb[30].mxu1 }
 0x3bf   : > { %2303 = vtanh.f32 %v913_v27  ;;  %v916_v32 = vadd.f32 %v1996_v31, %v773_v54  ;;  %v907_v33 = vpop.f32.mrb[31].mxu1  ;;  %2017 = vmatprep.mubr.bf16.mxu0 %v953_v29 }
 0x3c0   : > { %2305 = vtanh.f32 %v905_v30  ;;  %v908_v34 = vadd.f32 %v907_v33, %v773_v54  ;;  %2018 = vmatmul.mubr.bf16.gmra.mrb[36].mxu0 %v954_v26  ;;  %v2774_v54 = vrot.slane %v2621_v40, %v961_v53 }
 0x3c1   : > { %v2296_v35 = vpop.eup %2295  ;;  %2307 = vtanh.f32 %v916_v32 }
 0x3c2   : > { %v2298_v36 = vpop.eup %2297  ;;  %2309 = vtanh.f32 %v908_v34 }
 0x3c3   : > { %v2300_v37 = vpop.eup %2299 }
 0x3c4   : > { %v2302_v39 = vpop.eup %2301  ;;  %v956_v41 = vpack.c.bf16 %v2300_v37, %v2296_v35 }
 0x3c5   : > { %v955_v42 = vpack.c.bf16 %v2302_v39, %v2298_v36 }
 0x3c7   : > { %2021 = vmatprep.mubr.bf16.mxu0 %v955_v42 }
 0x3c8   : > { %2022 = vmatmul.mubr.bf16.gmra.mrb[40].mxu0 %v956_v41 }
 0x3c9   : > { %v2304_v43 = vpop.eup %2303 }
 0x3ca   : > { %v2306_v44 = vpop.eup %2305 }
 0x3cb   : > { %v2308_v45 = vpop.eup %2307 }
 0x3cc   : > { %v2310_v46 = vpop.eup %2309  ;;  %v958_v47 = vpack.c.bf16 %v2308_v45, %v2304_v43 }
 0x3cd   : > { %v957_v48 = vpack.c.bf16 %v2310_v46, %v2306_v44 }
 0x3cf   : > { %2025 = vmatprep.mubr.bf16.mxu0 %v957_v48 }
 0x3d0   : > { %2026 = vmatmul.mubr.bf16.gmra.mrb[44].mxu0 %v958_v47 }
 0x48b   : > { %v2015_v55 = vpop.f32.mrb[32].mxu0 }
 0x48c   : > { %v1054_v56 = vadd.f32 %v2015_v55, %v2774_v54  ;;  %v1045_v57 = vpop.f32.mrb[33].mxu0 }
 0x48d   : > { %v1046_v58 = vadd.f32 %v1045_v57, %v2774_v54  ;;  %v2016_v59 = vpop.f32.mrb[34].mxu0 }
 0x48e   : > { %2311 = vtanh.f32 %v1054_v56  ;;  %v1057_v60 = vadd.f32 %v2016_v59, %v2774_v54  ;;  %v1048_v61 = vpop.f32.mrb[35].mxu0 }
 0x48f   : > { %2313 = vtanh.f32 %v1046_v58  ;;  %v1049_v62 = vadd.f32 %v1048_v61, %v2774_v54 }
 0x490   : > { %2315 = vtanh.f32 %v1057_v60 }
 0x491   : > { %2317 = vtanh.f32 %v1049_v62 }
 0x493   : > { %v2019_v38 = vpop.f32.mrb[36].mxu0 }
 0x494   : > { %v1070_v40 = vadd.f32 %v2019_v38, %v2774_v54  ;;  %v1061_v63 = vpop.f32.mrb[37].mxu0 }
 0x495   : > { %v1062_v0 = vadd.f32 %v1061_v63, %v2774_v54  ;;  %v2020_v1 = vpop.f32.mrb[38].mxu0 }
 0x496   : > { %2319 = vtanh.f32 %v1070_v40  ;;  %v1073_v2 = vadd.f32 %v2020_v1, %v2774_v54  ;;  %v1064_v3 = vpop.f32.mrb[39].mxu0 }
 0x497   : > { %2321 = vtanh.f32 %v1062_v0  ;;  %v1065_v4 = vadd.f32 %v1064_v3, %v2774_v54 }
 0x498   : > { %v2312_v5 = vpop.eup %2311  ;;  %2323 = vtanh.f32 %v1073_v2 }
 0x499   : > { %v2314_v6 = vpop.eup %2313  ;;  %2325 = vtanh.f32 %v1065_v4 }
 0x49a   : > { %v2316_v7 = vpop.eup %2315 }
 0x49b   : > { %v2318_v8 = vpop.eup %2317  ;;  %v2023_v9 = vpop.f32.mrb[40].mxu0  ;;  %v1125_v10 = vpack.c.bf16 %v2316_v7, %v2312_v5 }
 0x49c   : > { %v1086_v11 = vadd.f32 %v2023_v9, %v2774_v54  ;;  %v1077_v12 = vpop.f32.mrb[41].mxu0  ;;  %v1124_v13 = vpack.c.bf16 %v2318_v8, %v2314_v6 }
 0x49d   : > { %v1078_v14 = vadd.f32 %v1077_v12, %v2774_v54  ;;  %v2024_v15 = vpop.f32.mrb[42].mxu0 }
 0x49e   : > { %2327 = vtanh.f32 %v1086_v11  ;;  %v1089_v16 = vadd.f32 %v2024_v15, %v2774_v54  ;;  %v1080_v17 = vpop.f32.mrb[43].mxu0  ;;  %2045 = vmatprep.mubr.bf16.mxu1 %v1124_v13  ;;  %2061 = vmatprep.subr.bf16.mxu0 %v1124_v13 }
 0x49f   : > { %2329 = vtanh.f32 %v1078_v14  ;;  %v1081_v18 = vadd.f32 %v1080_v17, %v2774_v54  ;;  %2046 = vmatmul.mubr.bf16.vlgmr.msra.gmra.mrb[32].mxu1 %v1125_v10  ;;  %2062 = vmatpush3.bf16.xpose.msra.mxu0 %v1124_v13 }
 0x4a0   : > { %v2320_v19 = vpop.eup %2319  ;;  %2331 = vtanh.f32 %v1089_v16  ;;  %2063 = vmatprep.subr.bf16.mxu0 %v1125_v10 }
 0x4a1   : > { %v2322_v20 = vpop.eup %2321  ;;  %2333 = vtanh.f32 %v1081_v18 }
 0x4a2   : > { %v2324_v21 = vpop.eup %2323 }
 0x4a3   : > { %v2326_v22 = vpop.eup %2325  ;;  %v2027_v23 = vpop.f32.mrb[44].mxu0  ;;  %v1127_v24 = vpack.c.bf16 %v2324_v21, %v2320_v19 }
 0x4a4   : > { %v1102_v25 = vadd.f32 %v2027_v23, %v2774_v54  ;;  %v1093_v26 = vpop.f32.mrb[45].mxu0  ;;  %v1126_v27 = vpack.c.bf16 %v2326_v22, %v2322_v20 }
 0x4a5   : > { %v1094_v28 = vadd.f32 %v1093_v26, %v2774_v54  ;;  %v2028_v29 = vpop.f32.mrb[46].mxu0 }
 0x4a6   : > { %2335 = vtanh.f32 %v1102_v25  ;;  %v1105_v30 = vadd.f32 %v2028_v29, %v2774_v54  ;;  %v1096_v31 = vpop.f32.mrb[47].mxu0  ;;  %2049 = vmatprep.mubr.bf16.mxu1 %v1126_v27 }
 0x4a7   : > { %2337 = vtanh.f32 %v1094_v28  ;;  %v1097_v32 = vadd.f32 %v1096_v31, %v2774_v54  ;;  %2050 = vmatmul.mubr.bf16.gmra.mrb[36].mxu1 %v1127_v24  ;;  %2064 = vmatpush3.bf16.xpose.msra.mxu0 %v1125_v10 }
 0x4a8   : > { %v2328_v33 = vpop.eup %2327  ;;  %2339 = vtanh.f32 %v1105_v30  ;;  %2065 = vmatprep.subr.bf16.mxu0 %v1126_v27 }
 0x4a9   : > { %v2330_v34 = vpop.eup %2329  ;;  %2341 = vtanh.f32 %v1097_v32 }
 0x4aa   : > { %v2332_v35 = vpop.eup %2331 }
 0x4ab   : > { %v2334_v36 = vpop.eup %2333  ;;  %v1129_v37 = vpack.c.bf16 %v2332_v35, %v2328_v33 }
 0x4ac   : > { %v1128_v39 = vpack.c.bf16 %v2334_v36, %v2330_v34 }
 0x4ae   : > { %2053 = vmatprep.mubr.bf16.mxu1 %v1128_v39  ;;  %2093 = vmatprep.subr.bf16.mxu1 %v1128_v39 }
 0x4af   : > { %2054 = vmatmul.mubr.bf16.gmra.mrb[40].mxu1 %v1129_v37  ;;  %2066 = vmatpush3.bf16.xpose.msra.mxu0 %v1126_v27 }
 0x4b0   : > { %v2336_v41 = vpop.eup %2335  ;;  %2097 = vmatpush3.bf16.xpose.msra.mxu1 %v1128_v39  ;;  %2067 = vmatprep.subr.bf16.mxu0 %v1127_v24 }
 0x4b1   : > { %v2338_v42 = vpop.eup %2337  ;;  %2094 = vmatprep.subr.bf16.mxu1 %v1129_v37 }
 0x4b2   : > { %v2340_v43 = vpop.eup %2339 }
 0x4b3   : > { %v2342_v44 = vpop.eup %2341  ;;  %v1131_v45 = vpack.c.bf16 %v2340_v43, %v2336_v41 }
 0x4b4   : > { %v1130_v46 = vpack.c.bf16 %v2342_v44, %v2338_v42 }
 0x4b6   : > { %2057 = vmatprep.mubr.bf16.mxu1 %v1130_v46 }
 0x4b7   : > { %2058 = vmatmul.mubr.bf16.gmra.mrb[44].mxu1 %v1131_v45  ;;  %2068 = vmatpush3.bf16.xpose.msra.mxu0 %v1127_v24 }
 0x4b8   : > { %2098 = vmatpush3.bf16.xpose.msra.mxu1 %v1129_v37  ;;  %2077 = vmatprep.subr.bf16.mxu0 %v1128_v39 }
 0x4b9   : > { %2095 = vmatprep.subr.bf16.mxu1 %v1130_v46 }
 0x4c0   : > { %2099 = vmatpush3.bf16.xpose.msra.mxu1 %v1130_v46 }
 0x4c1   : > { %2096 = vmatprep.subr.bf16.mxu1 %v1131_v45 }
 0x4c8   : > { %2100 = vmatpush3.bf16.xpose.msra.mxu1 %v1131_v45 }
 0x572   : > { %v2047_v47 = vpop.f32.mrb[32].mxu1 }
 0x573   : > { %v1230_v48 = vpop.f32.mrb[33].mxu1 }
 0x574   : > { %v2048_v49 = vpop.f32.mrb[34].mxu1 }
 0x575   : > { %v1294_v50 = vpack.c.bf16 %v2048_v49, %v2047_v47  ;;  %v1233_v51 = vpop.f32.mrb[35].mxu1 }
 0x576   : > { %v1293_v52 = vpack.c.bf16 %v1233_v51, %v1230_v48 }
 0x578   : > { %2069 = vmatprep.mubr.bf16.mxu0 %v1293_v52 }
 0x579   : > { %2070 = vmatmul.mubr.bf16.vlgmr.msra.gmra.mrb[48].mxu0 %v1294_v50 }
 0x57a   : > { %2078 = vmatpush3.bf16.xpose.msra.mxu0 %v1128_v39  ;;  %v2051_v53 = vpop.f32.mrb[36].mxu1 }
 0x57b   : > { %2079 = vmatprep.subr.bf16.mxu0 %v1129_v37  ;;  %v1246_v54 = vpop.f32.mrb[37].mxu1 }
 0x57c   : > { %v2052_v55 = vpop.f32.mrb[38].mxu1 }
 0x57d   : > { %v1296_v56 = vpack.c.bf16 %v2052_v55, %v2051_v53  ;;  %v1249_v57 = vpop.f32.mrb[39].mxu1 }
 0x57e   : > { %v1295_v58 = vpack.c.bf16 %v1249_v57, %v1246_v54 }
 0x580   : > { %2073 = vmatprep.mubr.bf16.mxu0 %v1295_v58 }
 0x581   : > { %2074 = vmatmul.mubr.bf16.gmra.mrb[52].mxu0 %v1296_v56 }
 0x582   : > { %2080 = vmatpush3.bf16.xpose.msra.mxu0 %v1129_v37  ;;  %v2055_v59 = vpop.f32.mrb[40].mxu1 }
 0x583   : > { %2081 = vmatprep.subr.bf16.mxu0 %v1130_v46  ;;  %v1262_v60 = vpop.f32.mrb[41].mxu1 }
 0x584   : > { %v2056_v61 = vpop.f32.mrb[42].mxu1 }
 0x585   : > { %v1298_v62 = vpack.c.bf16 %v2056_v61, %v2055_v59  ;;  %v1265_v38 = vpop.f32.mrb[43].mxu1 }
 0x586   : > { %v1297_v40 = vpack.c.bf16 %v1265_v38, %v1262_v60 }
 0x588   : > { %2085 = vmatprep.mubr.bf16.mxu0 %v1297_v40 }
 0x58a   : > { %2082 = vmatpush3.bf16.xpose.msra.mxu0 %v1130_v46  ;;  %v2059_v63 = vpop.f32.mrb[44].mxu1 }
 0x58b   : > { %2083 = vmatprep.subr.bf16.mxu0 %v1131_v45  ;;  %v1278_v0 = vpop.f32.mrb[45].mxu1 }
 0x58c   : > { %v2060_v1 = vpop.f32.mrb[46].mxu1 }
 0x58d   : > { %v1300_v2 = vpack.c.bf16 %v2060_v1, %v2059_v63  ;;  %v1281_v3 = vpop.f32.mrb[47].mxu1 }
 0x58e   : > { %v1299_v4 = vpack.c.bf16 %v1281_v3, %v1278_v0 }
 0x590   : > { %2089 = vmatprep.mubr.bf16.mxu1 %v1299_v4 }
 0x591   : > { %2090 = vmatmul.mubr.bf16.vlgmr.msra.gmra.mrb[48].mxu1 %v1300_v2 }
 0x592   : > { %2084 = vmatpush3.bf16.xpose.msra.mxu0 %v1131_v45 }
 0x599   : > { %2086 = vmatmul.mubr.bf16.vlgmr.msra.gmra.mrb[56].mxu0 %v1298_v62 }
 0x64c   : > { %v2071_v5 = vpop.f32.mrb[48].mxu0 }
 0x64d   : > { %v1738_v6 = vmul.f32 -1.442695, %v2071_v5  ;;  %v1344_v7 = vpop.f32.mrb[49].mxu0 }
 0x64e   : > { %v1736_v8 = vmul.f32 -1.442695, %v1344_v7  ;;  %v2072_v9 = vpop.f32.mrb[50].mxu0 }
 0x64f   : > { %2343 = vpow2.f32 %v1738_v6  ;;  %v1739_v10 = vmul.f32 -1.442695, %v2072_v9  ;;  %v1347_v11 = vpop.f32.mrb[51].mxu0 }
 0x650   : > { %2345 = vpow2.f32 %v1736_v8  ;;  %v1737_v12 = vmul.f32 -1.442695, %v1347_v11 }
 0x651   : > { %2347 = vpow2.f32 %v1739_v10 }
 0x652   : > { %2349 = vpow2.f32 %v1737_v12 }
 0x654   : > { %v2075_v13 = vpop.f32.mrb[52].mxu0 }
 0x655   : > { %v1742_v14 = vmul.f32 -1.442695, %v2075_v13  ;;  %v1360_v15 = vpop.f32.mrb[53].mxu0 }
 0x656   : > { %v1740_v16 = vmul.f32 -1.442695, %v1360_v15  ;;  %v2076_v17 = vpop.f32.mrb[54].mxu0 }
 0x657   : > { %2351 = vpow2.f32 %v1742_v14  ;;  %v1743_v18 = vmul.f32 -1.442695, %v2076_v17  ;;  %v1363_v19 = vpop.f32.mrb[55].mxu0 }
 0x658   : > { %2353 = vpow2.f32 %v1740_v16  ;;  %v1741_v20 = vmul.f32 -1.442695, %v1363_v19 }
 0x659   : > { %v2344_v21 = vpop.eup %2343  ;;  %2355 = vpow2.f32 %v1743_v18 }
 0x65a   : > { %v2346_v22 = vpop.eup %2345  ;;  %v1401_v23 = vadd.f32 1.0, %v2344_v21  ;;  %2357 = vpow2.f32 %v1741_v20 }
 0x65b   : > { %v2348_v24 = vpop.eup %2347  ;;  %v1399_v25 = vadd.f32 1.0, %v2346_v22 }
 0x65c   : > { %v2350_v26 = vpop.eup %2349  ;;  %2359 = vrcp.f32 %v1401_v23  ;;  %v1402_v27 = vadd.f32 1.0, %v2348_v24 }
 0x65d   : > { %2361 = vrcp.f32 %v1399_v25  ;;  %v1400_v28 = vadd.f32 1.0, %v2350_v26 }
 0x65e   : > { %2363 = vrcp.f32 %v1402_v27 }
 0x65f   : > { %2365 = vrcp.f32 %v1400_v28 }
 0x661   : > { %v2352_v29 = vpop.eup %2351 }
 0x662   : > { %v2354_v30 = vpop.eup %2353  ;;  %v1405_v31 = vadd.f32 1.0, %v2352_v29 }
 0x663   : > { %v2356_v32 = vpop.eup %2355  ;;  %v1403_v33 = vadd.f32 1.0, %v2354_v30 }
 0x664   : > { %v2358_v34 = vpop.eup %2357  ;;  %2367 = vrcp.f32 %v1405_v31  ;;  %v1406_v35 = vadd.f32 1.0, %v2356_v32  ;;  %v2091_v36 = vpop.f32.mrb[48].mxu1 }
 0x665   : > { %2369 = vrcp.f32 %v1403_v33  ;;  %v1404_v37 = vadd.f32 1.0, %v2358_v34  ;;  %v1758_v39 = vmul.f32 -1.442695, %v2091_v36  ;;  %v1491_v41 = vpop.f32.mrb[49].mxu1 }
 0x666   : > { %v2360_v42 = vpop.eup %2359  ;;  %2371 = vrcp.f32 %v1406_v35  ;;  %v1756_v43 = vmul.f32 -1.442695, %v1491_v41  ;;  %v2092_v44 = vpop.f32.mrb[50].mxu1 }
 0x667   : > { %v2362_v45 = vpop.eup %2361  ;;  %1426 = vst.msk [vmem:[%s2795_s29 + $0x10] sm:$0xff] %vm1423_vm2, %v2360_v42  ;;  %2373 = vrcp.f32 %v1404_v37  ;;  %v1759_v46 = vmul.f32 -1.442695, %v2092_v44  ;;  %v1494_v47 = vpop.f32.mrb[51].mxu1 }
 0x668   : > { %v2364_v48 = vpop.eup %2363  ;;  %1424 = vst.msk [vmem:[%s2795_s29] sm:$0xff] %vm1423_vm2, %v2362_v45  ;;  %2375 = vpow2.f32 %v1758_v39  ;;  %v1757_v49 = vmul.f32 -1.442695, %v1494_v47 }
 0x669   : > { %v2366_v50 = vpop.eup %2365  ;;  %1427 = vst.msk [vmem:[%s2795_s29 + $0x18] sm:$0xff] %vm1423_vm2, %v2364_v48  ;;  %2377 = vpow2.f32 %v1756_v43 }
 0x66a   : > { %1425 = vst.msk [vmem:[%s2795_s29 + $0x8] sm:$0xff] %vm1423_vm2, %v2366_v50  ;;  %2379 = vpow2.f32 %v1759_v46 }
 0x66b   : > { %2381 = vpow2.f32 %v1757_v49 }
 0x66c   : > { %v2087_v51 = vpop.f32.mrb[56].mxu0 }
 0x66d   : > { %v1754_v52 = vmul.f32 -1.442695, %v2087_v51  ;;  %v1475_v53 = vpop.f32.mrb[57].mxu0 }
 0x66e   : > { %v2368_v54 = vpop.eup %2367  ;;  %v1752_v55 = vmul.f32 -1.442695, %v1475_v53  ;;  %v2088_v56 = vpop.f32.mrb[58].mxu0 }
 0x66f   : > { %v2370_v57 = vpop.eup %2369  ;;  %1430 = vst.msk [vmem:[%s2795_s29 + $0x30] sm:$0xff] %vm1423_vm2, %v2368_v54  ;;  %2383 = vpow2.f32 %v1754_v52  ;;  %v1755_v58 = vmul.f32 -1.442695, %v2088_v56  ;;  %v1478_v59 = vpop.f32.mrb[59].mxu0 }
 0x670   : > { %v2372_v60 = vpop.eup %2371  ;;  %1428 = vst.msk [vmem:[%s2795_s29 + $0x20] sm:$0xff] %vm1423_vm2, %v2370_v57  ;;  %2385 = vpow2.f32 %v1752_v55  ;;  %v1753_v61 = vmul.f32 -1.442695, %v1478_v59 }
 0x671   : > { %v2374_v62 = vpop.eup %2373  ;;  %1431 = vst.msk [vmem:[%s2795_s29 + $0x38] sm:$0xff] %vm1423_vm2, %v2372_v60  ;;  %2387 = vpow2.f32 %v1755_v58 }
 0x672   : > { %v2376_v38 = vpop.eup %2375  ;;  %1429 = vst.msk [vmem:[%s2795_s29 + $0x28] sm:$0xff] %vm1423_vm2, %v2374_v62  ;;  %2389 = vpow2.f32 %v1753_v61 }
 0x673   : > { %v2378_v40 = vpop.eup %2377  ;;  %v1536_v63 = vadd.f32 1.0, %v2376_v38 }
 0x674   : > { %v2380_v0 = vpop.eup %2379  ;;  %v1534_v1 = vadd.f32 1.0, %v2378_v40 }
 0x675   : > { %v2382_v2 = vpop.eup %2381  ;;  %2391 = vrcp.f32 %v1536_v63  ;;  %v1537_v3 = vadd.f32 1.0, %v2380_v0 }
 0x676   : > { %2393 = vrcp.f32 %v1534_v1  ;;  %v1535_v4 = vadd.f32 1.0, %v2382_v2 }
 0x677   : > { %2395 = vrcp.f32 %v1537_v3 }
 0x678   : > { %2397 = vrcp.f32 %v1535_v4 }
 0x679   : > { %v2384_v5 = vpop.eup %2383 }
 0x67a   : > { %v2386_v6 = vpop.eup %2385  ;;  %v1532_v7 = vadd.f32 1.0, %v2384_v5 }
 0x67b   : > { %v2388_v8 = vpop.eup %2387  ;;  %v1530_v9 = vadd.f32 1.0, %v2386_v6 }
 0x67c   : > { %v2390_v10 = vpop.eup %2389  ;;  %2399 = vrcp.f32 %v1532_v7  ;;  %v1533_v11 = vadd.f32 1.0, %v2388_v8 }
 0x67d   : > { %2401 = vrcp.f32 %v1530_v9  ;;  %v1531_v12 = vadd.f32 1.0, %v2390_v10 }
 0x67e   : > { %2403 = vrcp.f32 %v1533_v11 }
 0x67f   : > { %v2392_v13 = vpop.eup %2391  ;;  %2405 = vrcp.f32 %v1531_v12 }
 0x680   : > { %v2394_v14 = vpop.eup %2393  ;;  %1766 = vst.msk [vmem:[%s2795_s29 + $0x70] sm:$0xff] %vm1423_vm2, %v2392_v13 }
 0x681   : > { %v2396_v15 = vpop.eup %2395  ;;  %1764 = vst.msk [vmem:[%s2795_s29 + $0x60] sm:$0xff] %vm1423_vm2, %v2394_v14 }
 0x682   : > { %v2398_v16 = vpop.eup %2397  ;;  %1767 = vst.msk [vmem:[%s2795_s29 + $0x78] sm:$0xff] %vm1423_vm2, %v2396_v15 }
 0x683   : > { %1765 = vst.msk [vmem:[%s2795_s29 + $0x68] sm:$0xff] %vm1423_vm2, %v2398_v16 }
 0x686   : > { %v2400_v17 = vpop.eup %2399 }
 0x687   : > { %v2402_v18 = vpop.eup %2401  ;;  %1762 = vst.msk [vmem:[%s2795_s29 + $0x50] sm:$0xff] %vm1423_vm2, %v2400_v17 }
 0x688   : > { %v2404_v19 = vpop.eup %2403  ;;  %1760 = vst.msk [vmem:[%s2795_s29 + $0x40] sm:$0xff] %vm1423_vm2, %v2402_v18 }
 0x689   : > { %v2406_v20 = vpop.eup %2405  ;;  %1763 = vst.msk [vmem:[%s2795_s29 + $0x58] sm:$0xff] %vm1423_vm2, %v2404_v19 }
 0x68a   : > { %1761 = vst.msk [vmem:[%s2795_s29 + $0x48] sm:$0xff] %vm1423_vm2, %v2406_v20 }
 0x68b   : > { %2420 = shalt.err (!%p2417_p3)
}
 0x68c   : > { %s2421_s19 = scalar_lea.hbm %s2828_s8, 2048  ;;  %s2425_s25 = scalar_lea.hbm %s2884_s3, 8192 }
 0x68d   : > { %p2422_p4 = scmp.ne.s32.totalorder %s2828_s8, %s2421_s19  ;;  %p2426_p9 = scmp.lt.u32.totalorder %s2828_s8, %s2884_s3 }
 0x68e   : > { %p2427_p10 = scmp.lt.u32.totalorder %s2425_s25, %s2421_s19  ;;  %p2429_p12 = scmp.lt.u32.totalorder %s2421_s19, %s2828_s8 }
 0x68f   : > { %p2423_p7 = pnand %p2422_p4, %p2532_p5 }
 0x690   : > { %p2428_p11 = por %p2427_p10, %p2426_p9 }
 0x691   : > { %p2424_p8 = pneg %p2423_p7 }
 0x692   : > { %p2430_p13 = por %p2429_p12, %p2428_p11 }
 0x694   : > { %p2431_p0 = pnand %p2430_p13, %p2424_p8 }
 0x696   : > { %2434 = shalt.err (!%p2431_p0)
}
 0x697   : > { %s2472_s27 = smov 128   ;;  %s2473_s28 = smov 8  }
 0x698   : > { %2101 = dma.vmem_to_hbm [thread:$0]  (%p2532_p5), %s2830_s5, 2048, %s2828_s8, %s2840_s16, %s2472_s27, %s2472_s27, %s2473_s28  }
 0x699 PF: > { %p2107_p1 = scmp.ge.s32.totalorder %s2469_s15, 2  ;;  %s1612_s29 = sand.u32 1, %s2457_s12  }
 0x69a   : > { %s1613_s30 = scalar_lea.sflag [#allocation3], %s1612_s29 }
 0x69b   : > { %p2104_p2 = pnand %p2107_p1, %p2536_p6 }
 0x69d   : > { %2452 = dma.done.wait (!%p2104_p2), %s1613_s30, 2048  }
 0x69e   : > { %2454 = vsyncadd (!%p2104_p2), %s1613_s30, 4294965248  ;;  %p14_p3 = scmp.ge.s32.totalorder %s2519_s18, 6   ;;  %s2887_s12 = smov %s2461_s13 }
 0x69f   : > { %s2888_s13 = smov %s2465_s14  ;;  %s2889_s14 = smov %s2530_s21 }
 0x6a0   : > { %s2890_s15 = smov %s2519_s18  ;;  %16 = sbr.rel (!%p14_p3) target bundleno = 3 (0x3), region = 77 }
 0x6a7   :  { %1618 = vsyncpa [#allocation3], 1 }
 0x6a8   :  { %1620 = vsyncpa [#allocation3 + $0x1], 1 }

</bundles_post_ra>
